<compile_context>
chip_gen: v5e
topology: v5e:2x2
jax: 0.10.0
libtpu: 0.0.40
codegen_flags: <defaults>
</compile_context>

<pallas_src>
import jax
import jax.numpy as jnp
from jax.experimental import pallas as pl
from jax.experimental.pallas import tpu as pltpu


def _reg_loss_kernel(boxes_ref, mask_ref,
                     regr_out, giou_out, num_out,
                     regr_acc, giou_acc, num_acc):
    i = pl.program_id(1)                     # tile index within this split

    @pl.when(i == 0)
    def _init():
        regr_acc[...] = jnp.zeros_like(regr_acc)
        giou_acc[...] = jnp.zeros_like(giou_acc)
        num_acc[...] = jnp.zeros_like(num_acc)

    b = boxes_ref[...].astype(jnp.float32)   # (8, T) cast in-VMEM (inputs may be bf16)
    m = mask_ref[...].astype(jnp.float32)    # (1, T)
    valid = m > 0.0

    pred = b[0:4, :]                         # (4, T)
    tgt = b[4:8, :]                          # (4, T)

    # --- smooth L1 (beta = 1.0), reduction='sum' -------------------------
    # NOTE: mask is applied once via where (mask assumed binary {0,1}; for
    # valid rows this is identical to torch's pre-multiply-by-mask).
    diff = jnp.abs(pred - tgt)
    sl1 = jnp.where(diff < 1.0, 0.5 * diff * diff, diff - 0.5)
    sl1 = jnp.where(valid, sl1, 0.0)
    regr_acc[...] += jnp.sum(sl1, axis=0, keepdims=True)        # (1, T)

    # --- GIoU between paired boxes (diag of generalized_box_iou) ---------
    p_cx, p_cy, p_w, p_h = b[0:1, :], b[1:2, :], b[2:3, :], b[3:4, :]
    t_cx, t_cy, t_w, t_h = b[4:5, :], b[5:6, :], b[6:7, :], b[7:8, :]

    ax1 = p_cx - 0.5 * p_w; ay1 = p_cy - 0.5 * p_h
    ax2 = p_cx + 0.5 * p_w; ay2 = p_cy + 0.5 * p_h
    bx1 = t_cx - 0.5 * t_w; by1 = t_cy - 0.5 * t_h
    bx2 = t_cx + 0.5 * t_w; by2 = t_cy + 0.5 * t_h

    area_a = (ax2 - ax1) * (ay2 - ay1)
    area_b = (bx2 - bx1) * (by2 - by1)

    inter_w = jnp.maximum(jnp.minimum(ax2, bx2) - jnp.maximum(ax1, bx1), 0.0)
    inter_h = jnp.maximum(jnp.minimum(ay2, by2) - jnp.maximum(ay1, by1), 0.0)
    inter = inter_w * inter_h
    union = area_a + area_b - inter

    enc_w = jnp.maximum(ax2, bx2) - jnp.minimum(ax1, bx1)
    enc_h = jnp.maximum(ay2, by2) - jnp.minimum(ay1, by1)
    area_c = enc_w * enc_h

    # EUP reciprocals (free slot); giou = iou - (area_c - union)/area_c
    inv_u = pl.reciprocal(union, approx=True)
    inv_c = pl.reciprocal(area_c, approx=True)
    giou = inter * inv_u + union * inv_c - 1.0

    # invalid / padded lanes are discarded here (their 0/0 never accumulates)
    giou_acc[...] += jnp.where(valid, 1.0 - giou, 0.0)           # (1, T)
    num_acc[...] += m

    @pl.when(i == pl.num_programs(1) - 1)
    def _fin():
        regr_out[...] = jnp.sum(regr_acc[...], keepdims=True).reshape(1, 1, 1)
        giou_out[...] = jnp.sum(giou_acc[...], keepdims=True).reshape(1, 1, 1)
        num_out[...] = jnp.sum(num_acc[...], keepdims=True).reshape(1, 1, 1)


def reg_loss(pred, target, mask, regr_weight=5.0, giou_weight=2.0,
             *, tile_n=2048, num_splits=2):
    """pred, target: (B, M, 4) cxcywh; mask: (B, M). Returns scalar loss (f32)."""
    B, M, D = pred.shape
    assert D == 4
    N = B * M

    # Round tile count up to a multiple of num_splits; pad N with zero-mask rows.
    tiles = max(1, pl.cdiv(N, tile_n))
    tiles = num_splits * pl.cdiv(tiles, num_splits)
    tiles_per_split = tiles // num_splits
    n_pad = tiles * tile_n

    # Lane-dense repack: coords on sublanes, boxes on lanes. Keep input dtype
    # (e.g. bf16) for the boxes; cast to f32 inside the kernel.
    pred2 = pred.reshape(N, 4)
    tgt2 = target.reshape(N, 4)
    boxes = jnp.concatenate([pred2.T, tgt2.T], axis=0)           # (8, N)
    boxes = jnp.pad(boxes, ((0, 0), (0, n_pad - N)))             # (8, N_pad)
    mask2 = jnp.pad(mask.reshape(N).astype(jnp.float32),
                    (0, n_pad - N)).reshape(1, n_pad)            # (1, N_pad)

    out_sds = jax.ShapeDtypeStruct((num_splits, 1, 1), jnp.float32)
    regr_p, giou_p, num_p = pl.pallas_call(
        _reg_loss_kernel,
        out_shape=(out_sds, out_sds, out_sds),
        grid_spec=pltpu.PrefetchScalarGridSpec(
            num_scalar_prefetch=0,
            grid=(num_splits, tiles_per_split),
            in_specs=[
                pl.BlockSpec((8, tile_n),
                             lambda p, i: (0, p * tiles_per_split + i)),
                pl.BlockSpec((1, tile_n),
                             lambda p, i: (0, p * tiles_per_split + i)),
            ],
            out_specs=[
                pl.BlockSpec((1, 1, 1), lambda p, i: (p, 0, 0)),
                pl.BlockSpec((1, 1, 1), lambda p, i: (p, 0, 0)),
                pl.BlockSpec((1, 1, 1), lambda p, i: (p, 0, 0)),
            ],
            scratch_shapes=[pltpu.VMEM((1, tile_n), jnp.float32)] * 3,
        ),
        compiler_params=pltpu.CompilerParams(
            dimension_semantics=("parallel", "arbitrary")),
    )(boxes, mask2)

    # TODO(synk): torch reference accumulates giou_loss in float64; TPU kernel
    # uses f32 with per-lane two-level sums to limit drift.
    num_total = jnp.sum(num_p)
    denom = num_total + 1e-9
    regr_l = jnp.sum(regr_p) / denom
    giou_l = jnp.sum(giou_p) / denom
    return regr_weight * regr_l + giou_weight * giou_l


if __name__ == "__main__":
    key = jax.random.PRNGKey(0)
    kp, kt, km = jax.random.split(key, 3)

    B, M = 2, 8
    # positive cxcywh boxes so valid entries are well-formed
    pred = jax.random.uniform(kp, (B, M, 4), minval=0.1, maxval=1.0,
                              dtype=jnp.float32)
    target = jax.random.uniform(kt, (B, M, 4), minval=0.1, maxval=1.0,
                                dtype=jnp.float32)
    mask = (jax.random.uniform(km, (B, M)) > 0.3).astype(jnp.float32)

    loss = reg_loss(pred, target, mask, regr_weight=5.0, giou_weight=2.0)
    jax.block_until_ready(loss)
    print("KERNEL_OK")
</pallas_src>

<mosaic_0001>
module attributes {stable_mosaic.version = 11 : i64} {
  func.func @_reg_loss_kernel(%arg0: i32, %arg1: i32, %arg2: memref<8x2048xf32, #tpu.memory_space<vmem>>, %arg3: memref<1x2048xf32, #tpu.memory_space<vmem>>, %arg4: memref<1x1x1xf32, #tpu.memory_space<vmem>>, %arg5: memref<1x1x1xf32, #tpu.memory_space<vmem>>, %arg6: memref<1x1x1xf32, #tpu.memory_space<vmem>>, %arg7: memref<1x2048xf32, #tpu.memory_space<vmem>>, %arg8: memref<1x2048xf32, #tpu.memory_space<vmem>>, %arg9: memref<1x2048xf32, #tpu.memory_space<vmem>>) attributes {dimension_semantics = [#tpu.dimension_semantics<parallel>, #tpu.dimension_semantics<arbitrary>], iteration_bounds = array<i64: 2, 1>, scalar_prefetch = 0 : i64, scratch_operands = 3 : i64, tpu.core_type = #tpu.core_type<tc>, window_params = [{transform_indices = @transform_0, window_bounds = array<i64: 8, 2048>}, {transform_indices = @transform_1, window_bounds = array<i64: 1, 2048>}, {transform_indices = @transform_2, window_bounds = array<i64: 1, 1, 1>}, {transform_indices = @transform_3, window_bounds = array<i64: 1, 1, 1>}, {transform_indices = @transform_4, window_bounds = array<i64: 1, 1, 1>}]} {
    %c0_i32 = arith.constant 0 : i32
    %0 = arith.cmpi eq, %arg1, %c0_i32 : i32
    %1 = arith.extui %0 : i1 to i32
    %c0_i32_0 = arith.constant 0 : i32
    %2 = arith.cmpi ne, %1, %c0_i32_0 : i32
    scf.if %2 {
      %cst_36 = arith.constant 0.000000e+00 : f32
      %106 = vector.broadcast %cst_36 : f32 to vector<1x2048xf32>
      %c0_37 = arith.constant 0 : index
      %c0_38 = arith.constant 0 : index
      %107 = vector.load %arg7[%c0_37, %c0_38] : memref<1x2048xf32, #tpu.memory_space<vmem>>, vector<1x2048xf32>
      tpu.vector_store %arg7[%c0_37, %c0_38], %106 {strides = array<i32>} : memref<1x2048xf32, #tpu.memory_space<vmem>>, vector<1x2048xf32>,
      %cst_39 = arith.constant 0.000000e+00 : f32
      %108 = vector.broadcast %cst_39 : f32 to vector<1x2048xf32>
      %c0_40 = arith.constant 0 : index
      %c0_41 = arith.constant 0 : index
      %109 = vector.load %arg8[%c0_40, %c0_41] : memref<1x2048xf32, #tpu.memory_space<vmem>>, vector<1x2048xf32>
      tpu.vector_store %arg8[%c0_40, %c0_41], %108 {strides = array<i32>} : memref<1x2048xf32, #tpu.memory_space<vmem>>, vector<1x2048xf32>,
      %cst_42 = arith.constant 0.000000e+00 : f32
      %110 = vector.broadcast %cst_42 : f32 to vector<1x2048xf32>
      %c0_43 = arith.constant 0 : index
      %c0_44 = arith.constant 0 : index
      %111 = vector.load %arg9[%c0_43, %c0_44] : memref<1x2048xf32, #tpu.memory_space<vmem>>, vector<1x2048xf32>
      tpu.vector_store %arg9[%c0_43, %c0_44], %110 {strides = array<i32>} : memref<1x2048xf32, #tpu.memory_space<vmem>>, vector<1x2048xf32>,
    } else {
    }
    %c0 = arith.constant 0 : index
    %c0_1 = arith.constant 0 : index
    %3 = vector.load %arg2[%c0, %c0_1] : memref<8x2048xf32, #tpu.memory_space<vmem>>, vector<8x2048xf32>
    %c0_2 = arith.constant 0 : index
    %c0_3 = arith.constant 0 : index
    %4 = vector.load %arg3[%c0_2, %c0_3] : memref<1x2048xf32, #tpu.memory_space<vmem>>, vector<1x2048xf32>
    %cst = arith.constant 0.000000e+00 : f32
    %5 = vector.broadcast %cst : f32 to vector<1x2048xf32>
    %6 = arith.cmpf ogt, %4, %5 : vector<1x2048xf32>
    %7 = vector.extract_strided_slice %3 {offsets = [0, 0], sizes = [4, 2048], strides = [1, 1]} : vector<8x2048xf32> to vector<4x2048xf32>
    %8 = vector.extract_strided_slice %3 {offsets = [4, 0], sizes = [4, 2048], strides = [1, 1]} : vector<8x2048xf32> to vector<4x2048xf32>
    %9 = arith.subf %7, %8 : vector<4x2048xf32>
    %10 = math.absf %9 : vector<4x2048xf32>
    %cst_4 = arith.constant 1.000000e+00 : f32
    %11 = vector.broadcast %cst_4 : f32 to vector<4x2048xf32>
    %12 = arith.cmpf olt, %10, %11 : vector<4x2048xf32>
    %cst_5 = arith.constant 5.000000e-01 : f32
    %13 = vector.broadcast %cst_5 : f32 to vector<4x2048xf32>
    %14 = arith.mulf %13, %10 : vector<4x2048xf32>
    %15 = arith.mulf %14, %10 : vector<4x2048xf32>
    %cst_6 = arith.constant 5.000000e-01 : f32
    %16 = vector.broadcast %cst_6 : f32 to vector<4x2048xf32>
    %17 = arith.subf %10, %16 : vector<4x2048xf32>
    %18 = arith.select %12, %15, %17 : vector<4x2048xi1>, vector<4x2048xf32>
    %cst_7 = arith.constant 0.000000e+00 : f32
    %19 = vector.shape_cast %6 : vector<1x2048xi1> to vector<1x2048xi1>
    %20 = vector.broadcast %19 : vector<1x2048xi1> to vector<4x2048xi1>
    %21 = vector.broadcast %cst_7 : f32 to vector<4x2048xf32>
    %22 = arith.select %20, %18, %21 : vector<4x2048xi1>, vector<4x2048xf32>
    %c0_8 = arith.constant 0 : index
    %c0_9 = arith.constant 0 : index
    %23 = vector.load %arg7[%c0_8, %c0_9] : memref<1x2048xf32, #tpu.memory_space<vmem>>, vector<1x2048xf32>
    %cst_10 = arith.constant dense<0.000000e+00> : vector<2048xf32>
    %24 = vector.multi_reduction <add>, %22, %cst_10 [0] : vector<4x2048xf32> to vector<2048xf32>
    %25 = vector.shape_cast %24 : vector<2048xf32> to vector<1x2048xf32>
    %26 = arith.addf %23, %25 : vector<1x2048xf32>
    %c0_11 = arith.constant 0 : index
    %c0_12 = arith.constant 0 : index
    %27 = vector.load %arg7[%c0_11, %c0_12] : memref<1x2048xf32, #tpu.memory_space<vmem>>, vector<1x2048xf32>
    tpu.vector_store %arg7[%c0_11, %c0_12], %26 {strides = array<i32>} : memref<1x2048xf32, #tpu.memory_space<vmem>>, vector<1x2048xf32>,
    %28 = vector.extract_strided_slice %3 {offsets = [0, 0], sizes = [1, 2048], strides = [1, 1]} : vector<8x2048xf32> to vector<1x2048xf32>
    %29 = vector.extract_strided_slice %3 {offsets = [1, 0], sizes = [1, 2048], strides = [1, 1]} : vector<8x2048xf32> to vector<1x2048xf32>
    %30 = vector.extract_strided_slice %3 {offsets = [2, 0], sizes = [1, 2048], strides = [1, 1]} : vector<8x2048xf32> to vector<1x2048xf32>
    %31 = vector.extract_strided_slice %3 {offsets = [3, 0], sizes = [1, 2048], strides = [1, 1]} : vector<8x2048xf32> to vector<1x2048xf32>
    %32 = vector.extract_strided_slice %3 {offsets = [4, 0], sizes = [1, 2048], strides = [1, 1]} : vector<8x2048xf32> to vector<1x2048xf32>
    %33 = vector.extract_strided_slice %3 {offsets = [5, 0], sizes = [1, 2048], strides = [1, 1]} : vector<8x2048xf32> to vector<1x2048xf32>
    %34 = vector.extract_strided_slice %3 {offsets = [6, 0], sizes = [1, 2048], strides = [1, 1]} : vector<8x2048xf32> to vector<1x2048xf32>
    %35 = vector.extract_strided_slice %3 {offsets = [7, 0], sizes = [1, 2048], strides = [1, 1]} : vector<8x2048xf32> to vector<1x2048xf32>
    %cst_13 = arith.constant 5.000000e-01 : f32
    %36 = vector.broadcast %cst_13 : f32 to vector<1x2048xf32>
    %37 = arith.mulf %36, %30 : vector<1x2048xf32>
    %38 = arith.subf %28, %37 : vector<1x2048xf32>
    %cst_14 = arith.constant 5.000000e-01 : f32
    %39 = vector.broadcast %cst_14 : f32 to vector<1x2048xf32>
    %40 = arith.mulf %39, %31 : vector<1x2048xf32>
    %41 = arith.subf %29, %40 : vector<1x2048xf32>
    %cst_15 = arith.constant 5.000000e-01 : f32
    %42 = vector.broadcast %cst_15 : f32 to vector<1x2048xf32>
    %43 = arith.mulf %42, %30 : vector<1x2048xf32>
    %44 = arith.addf %28, %43 : vector<1x2048xf32>
    %cst_16 = arith.constant 5.000000e-01 : f32
    %45 = vector.broadcast %cst_16 : f32 to vector<1x2048xf32>
    %46 = arith.mulf %45, %31 : vector<1x2048xf32>
    %47 = arith.addf %29, %46 : vector<1x2048xf32>
    %cst_17 = arith.constant 5.000000e-01 : f32
    %48 = vector.broadcast %cst_17 : f32 to vector<1x2048xf32>
    %49 = arith.mulf %48, %34 : vector<1x2048xf32>
    %50 = arith.subf %32, %49 : vector<1x2048xf32>
    %cst_18 = arith.constant 5.000000e-01 : f32
    %51 = vector.broadcast %cst_18 : f32 to vector<1x2048xf32>
    %52 = arith.mulf %51, %35 : vector<1x2048xf32>
    %53 = arith.subf %33, %52 : vector<1x2048xf32>
    %cst_19 = arith.constant 5.000000e-01 : f32
    %54 = vector.broadcast %cst_19 : f32 to vector<1x2048xf32>
    %55 = arith.mulf %54, %34 : vector<1x2048xf32>
    %56 = arith.addf %32, %55 : vector<1x2048xf32>
    %cst_20 = arith.constant 5.000000e-01 : f32
    %57 = vector.broadcast %cst_20 : f32 to vector<1x2048xf32>
    %58 = arith.mulf %57, %35 : vector<1x2048xf32>
    %59 = arith.addf %33, %58 : vector<1x2048xf32>
    %60 = arith.subf %44, %38 : vector<1x2048xf32>
    %61 = arith.subf %47, %41 : vector<1x2048xf32>
    %62 = arith.mulf %60, %61 : vector<1x2048xf32>
    %63 = arith.subf %56, %50 : vector<1x2048xf32>
    %64 = arith.subf %59, %53 : vector<1x2048xf32>
    %65 = arith.mulf %63, %64 : vector<1x2048xf32>
    %66 = arith.minimumf %44, %56 : vector<1x2048xf32>
    %67 = arith.maximumf %38, %50 : vector<1x2048xf32>
    %68 = arith.subf %66, %67 : vector<1x2048xf32>
    %cst_21 = arith.constant 0.000000e+00 : f32
    %69 = vector.broadcast %cst_21 : f32 to vector<1x2048xf32>
    %70 = arith.maximumf %68, %69 : vector<1x2048xf32>
    %71 = arith.minimumf %47, %59 : vector<1x2048xf32>
    %72 = arith.maximumf %41, %53 : vector<1x2048xf32>
    %73 = arith.subf %71, %72 : vector<1x2048xf32>
    %cst_22 = arith.constant 0.000000e+00 : f32
    %74 = vector.broadcast %cst_22 : f32 to vector<1x2048xf32>
    %75 = arith.maximumf %73, %74 : vector<1x2048xf32>
    %76 = arith.mulf %70, %75 : vector<1x2048xf32>
    %77 = arith.addf %62, %65 : vector<1x2048xf32>
    %78 = arith.subf %77, %76 : vector<1x2048xf32>
    %79 = arith.maximumf %44, %56 : vector<1x2048xf32>
    %80 = arith.minimumf %38, %50 : vector<1x2048xf32>
    %81 = arith.subf %79, %80 : vector<1x2048xf32>
    %82 = arith.maximumf %47, %59 : vector<1x2048xf32>
    %83 = arith.minimumf %41, %53 : vector<1x2048xf32>
    %84 = arith.subf %82, %83 : vector<1x2048xf32>
    %85 = arith.mulf %81, %84 : vector<1x2048xf32>
    %86 = tpu.reciprocal %78 {approx = true} : vector<1x2048xf32> -> vector<1x2048xf32>
    %87 = tpu.reciprocal %85 {approx = true} : vector<1x2048xf32> -> vector<1x2048xf32>
    %88 = arith.mulf %76, %86 : vector<1x2048xf32>
    %89 = arith.mulf %78, %87 : vector<1x2048xf32>
    %90 = arith.addf %88, %89 : vector<1x2048xf32>
    %cst_23 = arith.constant 1.000000e+00 : f32
    %91 = vector.broadcast %cst_23 : f32 to vector<1x2048xf32>
    %92 = arith.subf %90, %91 : vector<1x2048xf32>
    %c0_24 = arith.constant 0 : index
    %c0_25 = arith.constant 0 : index
    %93 = vector.load %arg8[%c0_24, %c0_25] : memref<1x2048xf32, #tpu.memory_space<vmem>>, vector<1x2048xf32>
    %cst_26 = arith.constant 1.000000e+00 : f32
    %94 = vector.broadcast %cst_26 : f32 to vector<1x2048xf32>
    %95 = arith.subf %94, %92 : vector<1x2048xf32>
    %cst_27 = arith.constant 0.000000e+00 : f32
    %96 = vector.broadcast %cst_27 : f32 to vector<1x2048xf32>
    %97 = arith.select %6, %95, %96 : vector<1x2048xi1>, vector<1x2048xf32>
    %98 = arith.addf %93, %97 : vector<1x2048xf32>
    %c0_28 = arith.constant 0 : index
    %c0_29 = arith.constant 0 : index
    %99 = vector.load %arg8[%c0_28, %c0_29] : memref<1x2048xf32, #tpu.memory_space<vmem>>, vector<1x2048xf32>
    tpu.vector_store %arg8[%c0_28, %c0_29], %98 {strides = array<i32>} : memref<1x2048xf32, #tpu.memory_space<vmem>>, vector<1x2048xf32>,
    %c0_30 = arith.constant 0 : index
    %c0_31 = arith.constant 0 : index
    %100 = vector.load %arg9[%c0_30, %c0_31] : memref<1x2048xf32, #tpu.memory_space<vmem>>, vector<1x2048xf32>
    %101 = arith.addf %100, %4 : vector<1x2048xf32>
    %c0_32 = arith.constant 0 : index
    %c0_33 = arith.constant 0 : index
    %102 = vector.load %arg9[%c0_32, %c0_33] : memref<1x2048xf32, #tpu.memory_space<vmem>>, vector<1x2048xf32>
    tpu.vector_store %arg9[%c0_32, %c0_33], %101 {strides = array<i32>} : memref<1x2048xf32, #tpu.memory_space<vmem>>, vector<1x2048xf32>,
    %c0_i32_34 = arith.constant 0 : i32
    %103 = arith.cmpi eq, %arg1, %c0_i32_34 : i32
    %104 = arith.extui %103 : i1 to i32
    %c0_i32_35 = arith.constant 0 : i32
    %105 = arith.cmpi ne, %104, %c0_i32_35 : i32
    scf.if %105 {
      %c0_36 = arith.constant 0 : index
      %c0_37 = arith.constant 0 : index
      %106 = vector.load %arg7[%c0_36, %c0_37] : memref<1x2048xf32, #tpu.memory_space<vmem>>, vector<1x2048xf32>
      %107 = vector.shape_cast %106 : vector<1x2048xf32> to vector<1x1x2048xf32>
      %cst_38 = arith.constant dense<0.000000e+00> : vector<1xf32>
      %108 = vector.multi_reduction <add>, %107, %cst_38 [1, 2] : vector<1x1x2048xf32> to vector<1xf32>
      %109 = vector.shape_cast %108 : vector<1xf32> to vector<1x1x1xf32>
      %110 = vector.extract %109[0, 0, 0] : f32 from vector<1x1x1xf32>
      %111 = vector.broadcast %110 : f32 to vector<1x1xf32>
      %112 = vector.shape_cast %111 : vector<1x1xf32> to vector<1x1x1xf32>
      %c0_39 = arith.constant 0 : index
      %c0_40 = arith.constant 0 : index
      %c0_41 = arith.constant 0 : index
      %113 = vector.load %arg4[%c0_39, %c0_40, %c0_41] : memref<1x1x1xf32, #tpu.memory_space<vmem>>, vector<1x1x1xf32>
      tpu.vector_store %arg4[%c0_39, %c0_40, %c0_41], %112 {strides = array<i32>} : memref<1x1x1xf32, #tpu.memory_space<vmem>>, vector<1x1x1xf32>,
      %c0_42 = arith.constant 0 : index
      %c0_43 = arith.constant 0 : index
      %114 = vector.load %arg8[%c0_42, %c0_43] : memref<1x2048xf32, #tpu.memory_space<vmem>>, vector<1x2048xf32>
      %115 = vector.shape_cast %114 : vector<1x2048xf32> to vector<1x1x2048xf32>
      %cst_44 = arith.constant dense<0.000000e+00> : vector<1xf32>
      %116 = vector.multi_reduction <add>, %115, %cst_44 [1, 2] : vector<1x1x2048xf32> to vector<1xf32>
      %117 = vector.shape_cast %116 : vector<1xf32> to vector<1x1x1xf32>
      %118 = vector.extract %117[0, 0, 0] : f32 from vector<1x1x1xf32>
      %119 = vector.broadcast %118 : f32 to vector<1x1xf32>
      %120 = vector.shape_cast %119 : vector<1x1xf32> to vector<1x1x1xf32>
      %c0_45 = arith.constant 0 : index
      %c0_46 = arith.constant 0 : index
      %c0_47 = arith.constant 0 : index
      %121 = vector.load %arg5[%c0_45, %c0_46, %c0_47] : memref<1x1x1xf32, #tpu.memory_space<vmem>>, vector<1x1x1xf32>
      tpu.vector_store %arg5[%c0_45, %c0_46, %c0_47], %120 {strides = array<i32>} : memref<1x1x1xf32, #tpu.memory_space<vmem>>, vector<1x1x1xf32>,
      %c0_48 = arith.constant 0 : index
      %c0_49 = arith.constant 0 : index
      %122 = vector.load %arg9[%c0_48, %c0_49] : memref<1x2048xf32, #tpu.memory_space<vmem>>, vector<1x2048xf32>
      %123 = vector.shape_cast %122 : vector<1x2048xf32> to vector<1x1x2048xf32>
      %cst_50 = arith.constant dense<0.000000e+00> : vector<1xf32>
      %124 = vector.multi_reduction <add>, %123, %cst_50 [1, 2] : vector<1x1x2048xf32> to vector<1xf32>
      %125 = vector.shape_cast %124 : vector<1xf32> to vector<1x1x1xf32>
      %126 = vector.extract %125[0, 0, 0] : f32 from vector<1x1x1xf32>
      %127 = vector.broadcast %126 : f32 to vector<1x1xf32>
      %128 = vector.shape_cast %127 : vector<1x1xf32> to vector<1x1x1xf32>
      %c0_51 = arith.constant 0 : index
      %c0_52 = arith.constant 0 : index
      %c0_53 = arith.constant 0 : index
      %129 = vector.load %arg6[%c0_51, %c0_52, %c0_53] : memref<1x1x1xf32, #tpu.memory_space<vmem>>, vector<1x1x1xf32>
      tpu.vector_store %arg6[%c0_51, %c0_52, %c0_53], %128 {strides = array<i32>} : memref<1x1x1xf32, #tpu.memory_space<vmem>>, vector<1x1x1xf32>,
    } else {
    }
    return
  }
  func.func @transform_0(%arg0: i32, %arg1: i32) -> (i32, i32) {
    %c1_i32 = arith.constant 1 : i32
    %0 = arith.muli %arg0, %c1_i32 : i32
    %1 = arith.addi %0, %arg1 : i32
    %c0_i32 = arith.constant 0 : i32
    %c0_i32_0 = arith.constant 0 : i32
    return %c0_i32, %1 : i32, i32
  }
  func.func @transform_1(%arg0: i32, %arg1: i32) -> (i32, i32) {
    %c1_i32 = arith.constant 1 : i32
    %0 = arith.muli %arg0, %c1_i32 : i32
    %1 = arith.addi %0, %arg1 : i32
    %c0_i32 = arith.constant 0 : i32
    %c0_i32_0 = arith.constant 0 : i32
    return %c0_i32, %1 : i32, i32
  }
  func.func @transform_2(%arg0: i32, %arg1: i32) -> (i32, i32, i32) {
    %c0_i32 = arith.constant 0 : i32
    %c0_i32_0 = arith.constant 0 : i32
    %c0_i32_1 = arith.constant 0 : i32
    return %arg0, %c0_i32, %c0_i32_0 : i32, i32, i32
  }
  func.func @transform_3(%arg0: i32, %arg1: i32) -> (i32, i32, i32) {
    %c0_i32 = arith.constant 0 : i32
    %c0_i32_0 = arith.constant 0 : i32
    %c0_i32_1 = arith.constant 0 : i32
    return %arg0, %c0_i32, %c0_i32_0 : i32, i32, i32
  }
  func.func @transform_4(%arg0: i32, %arg1: i32) -> (i32, i32, i32) {
    %c0_i32 = arith.constant 0 : i32
    %c0_i32_0 = arith.constant 0 : i32
    %c0_i32_1 = arith.constant 0 : i32
    return %arg0, %c0_i32, %c0_i32_0 : i32, i32, i32
  }
}

</mosaic_0001>

<bundles_post_ra>
// kernel: tpu_custom_call.1
= control target key start
LH: loop header
LB: loop body
LE: loop exit
PB: predicated region body
PF: predicated region fallthrough
CT: control target
= control target key end

     0   :  { %10 = vsyncpa [#allocation6], 0  ;;  %s3385_s0 = inlined_call_operand.hbm [shape: f32[8,4096], index: 0, kind: input, shape index: {}]   ;;  %s3386_s1 = inlined_call_operand.hbm [shape: f32[1,4096], index: 1, kind: input, shape index: {}]   ;;  %s3387_s2 = inlined_call_operand.vmem [shape: f32[2,1,1], index: 2, kind: output, shape index: {0}]   ;;  %s3388_s3 = inlined_call_operand.vmem [shape: f32[2,1,1], index: 3, kind: output, shape index: {1}]   ;;  %s3389_s4 = inlined_call_operand.vmem [shape: f32[2,1,1], index: 4, kind: output, shape index: {2}]  }
   0x1   :  { %12 = vsyncpa [#allocation6 + $0x1], 0 }
   0x2   :  { %13 = vsyncpa [#allocation8], 0 }
   0x3   :  { %15 = vsyncpa [#allocation8 + $0x1], 0  ;;  %s2167_s15 = smov 0   ;;  %s2169_s16 = smov 0  }
   0x4   :  { %s2171_s17 = smov 0   ;;  %s2173_s18 = smov 0  }
   0x5   :  { %s2175_s19 = smov 0   ;;  %s2177_s20 = smov 0  }
   0x6 LB: > { %s1847_s21 = sadd.s32 4294967295, %s2139_s20   ;;  %s33_s22 = sadd.s32 1, %s2135_s19  ;;  %s2139_s20 = sphi %s2177_s20, %s21_s20   ;;  %s2135_s19 = sphi %s2175_s19, %s3725_s19   ;;  %s2131_s18 = sphi %s2173_s18, %s3724_s18   ;;  %s2127_s17 = sphi %s2171_s17, %s3723_s17   ;;  %s2123_s16 = sphi %s2169_s16, %s3722_s16   ;;  %s2119_s15 = sphi %s2167_s15, %s3721_s15  }
   0x7   : > { %p35_p0 = scmp.ge.s32.totalorder %s33_s22, 2  ;;  %s42_s23 = sadd.s32 1, %s2127_s17 }
   0x8   : > { %p49_p1 = scmp.ne.s32.totalorder %s2127_s17, %s2123_s16  ;;  %p50_p2 = scmp.eq.s32.totalorder %s2139_s20, 0 }
   0x9   : > { %s3727_s22 = smov (%p35_p0, %s33_s22), 0  ;;  %p55_p4 = scmp.ne.s32.totalorder %s2123_s16, %s2119_s15 }
   0xa   : > { %p2203_p3 = por %p50_p2, %p49_p1  ;;  %s39_s25 = ssub.s32 %s2135_s19, %s3727_s22 }
   0xb   : > { %p56_p5 = scmp.eq.s32.totalorder %s1847_s21, 0  ;;  %p40_p6 = scmp.eq.s32.totalorder %s39_s25, 0 }
   0xc   : > { %p1911_p8 = scmp.lt.s32.totalorder %s2139_s20, 2  ;;  %s185_s28 = sand.u32 1, %s2127_s17  }
   0xd   : > { %p2210_p7 = por %p56_p5, %p55_p4  ;;  %s1893_s29 = sshll.u32 %s2135_s19, 7 }
   0xe   : > { %s2216_s27 = scalar_select %p40_p6, %s2127_s17, %s42_s23  }
   0xf   : > { %s1851_s30 = sshll.u32 %s185_s28, 7  ;;  %s195_s7 = scalar_lea.hbm %s3385_s0, %s1893_s29 }
  0x10   : > { %s197_s8 = sshll.u32 %s195_s7, 4  ;;  %s189_s9 = scalar_lea.vmem [#allocation5], %s1851_s30  ;;  %s198_s8 = int_to_ptr.hbm [resolvable:$true] %s197_s8 }
  0x11   : > { %s199_s10 = sshll.u32 %s189_s9, 4  ;;  %p2225_p9 = pnand %p1911_p8, %p2203_p3  ;;  %s200_s10 = int_to_ptr.vmem [resolvable:$true] %s199_s10 }
  0x12   : > { %p1856_p10 = scmp.ge.s32.totalorder %s2139_s20, 1  ;;  %p224_p11 = scmp.lt.s32.totalorder %s2139_s20, 3 }
  0x13   : > { %s1854_s12 = sshll.u32 %s185_s28, 4  ;;  %s186_s13 = scalar_lea.sflag [#allocation6], %s185_s28 }
  0x14   : > { %1907 = dma.hbm_to_vmem [thread:$0]  (!%p2225_p9), %s198_s8, 2048, %s200_s10, %s186_s13  }
  0x15   : > { %p225_p12 = pnand %p1856_p10, %p224_p11  ;;  %s1855_s14 = sshll.u32 %s2135_s19, 4 }
  0x16   : > { %s210_s15 = scalar_lea.vmem [#allocation7], %s1854_s12  ;;  %s215_s24 = scalar_lea.hbm %s3386_s1, %s1855_s14 }
  0x17   : > { %s219_s21 = sshll.u32 %s210_s15, 4  ;;  %s217_s29 = sshll.u32 %s215_s24, 4  ;;  %s220_s21 = int_to_ptr.vmem [resolvable:$true] %s219_s21  ;;  %s218_s29 = int_to_ptr.hbm [resolvable:$true] %s217_s29 }
  0x18   : > { %s207_s30 = scalar_lea.sflag [#allocation8], %s185_s28  ;;  %228 = sbr.rel (%p225_p12) target bundleno = 496 (0x1f0), region = 28 }
  0x19   : > { %1910 = dma.hbm_to_vmem [thread:$0]  (!%p2225_p9), %s218_s29, 256, %s220_s21, %s207_s30  }
  0x1d   : > { %s230_s5 = sand.u32 1, %s2123_s16  }
  0x1e   : > { %s1857_s6 = sshll.u32 %s230_s5, 7  ;;  %s231_s7 = scalar_lea.sflag [#allocation6], %s230_s5 }
  0x1f   : > { %s234_s8 = scalar_lea.vmem [#allocation5], %s1857_s6 }
  0x20   : > { %2110 = dma.done.wait (%p2210_p7), %s231_s7, 2048  }
  0x21   : > { %2112 = vsyncadd (%p2210_p7), %s231_s7, 4294965248  ;;  %s1858_s9 = sshll.u32 %s230_s5, 4  ;;  %s241_s10 = scalar_lea.sflag [#allocation8], %s230_s5 }
  0x22   : > { %s2244_s12 = scalar_lea.vmem [#allocation7], %s1858_s9 }
  0x23   : > { %2114 = dma.done.wait (%p2210_p7), %s241_s10, 256  }
  0x24   : > { %2116 = vsyncadd (%p2210_p7), %s241_s10, 4294967040  ;;  %v2250_v0 = vld [vmem:[%s234_s8] sm:$0xff]  ;;  %v2252_v1 = vld [vmem:[%s234_s8 + $0x8] sm:$0xff]  ;;  %p283_p13 = scmp.lt.s32.totalorder %s2131_s18, 1 }
  0x25   : > { %v2254_v2 = vld [vmem:[%s234_s8 + $0x10] sm:$0xff]  ;;  %v2256_v3 = vld [vmem:[%s234_s8 + $0x18] sm:$0xff]  ;;  %v2258_v4 = vld [vmem:[%s234_s8 + $0x20] sm:$0xff]  ;;  %v338_v13 = vrot.slane %v2250_v0, 4  ;;  %v339_v14 = vrot.slane %v2252_v1, 4 }
  0x26   : > { %v2260_v5 = vld [vmem:[%s234_s8 + $0x28] sm:$0xff]  ;;  %v2262_v6 = vld [vmem:[%s234_s8 + $0x30] sm:$0xff]  ;;  %v2264_v7 = vld [vmem:[%s234_s8 + $0x38] sm:$0xff]  ;;  %v340_v17 = vrot.slane %v2254_v2, 4  ;;  %v341_v18 = vrot.slane %v2256_v3, 4  ;;  %v342_v19 = vrot.slane %v2258_v4, 4 }
  0x27   : > { %v2266_v8 = vld [vmem:[%s234_s8 + $0x40] sm:$0xff]  ;;  %v2268_v9 = vld [vmem:[%s234_s8 + $0x48] sm:$0xff]  ;;  %v2270_v10 = vld [vmem:[%s234_s8 + $0x50] sm:$0xff]  ;;  %v343_v21 = vrot.slane %v2260_v5, 4  ;;  %v344_v22 = vrot.slane %v2262_v6, 4  ;;  %v345_v23 = vrot.slane %v2264_v7, 4  ;;  %v370_v31 = vsub.f32 %v2250_v0, %v338_v13 }
  0x28   : > { %3511 = vst [vmem:[#allocation11_spill] sm:$0xff] %v2268_v9  ;;  %v2272_v11 = vld [vmem:[%s234_s8 + $0x58] sm:$0xff]  ;;  %v2274_v12 = vld [vmem:[%s234_s8 + $0x60] sm:$0xff]  ;;  %v2278_v15 = vld [vmem:[%s234_s8 + $0x68] sm:$0xff]  ;;  %v346_v24 = vrot.slane %v2266_v8, 4  ;;  %v347_v25 = vrot.slane %v2268_v9, 4  ;;  %v371_v32 = vsub.f32 %v2252_v1, %v339_v14  ;;  %v372_v34 = vsub.f32 %v2254_v2, %v340_v17 }
  0x29   : > { %3512 = vst [vmem:[#allocation12_spill] sm:$0xff] %v2270_v10  ;;  %v2280_v16 = vld [vmem:[%s234_s8 + $0x70] sm:$0xff]  ;;  %v2285_v20 = vld [vmem:[%s234_s8 + $0x78] sm:$0xff]  ;;  %v348_v26 = vrot.slane %v2270_v10, 4  ;;  %v349_v27 = vrot.slane %v2272_v11, 4  ;;  %v350_v28 = vrot.slane %v2274_v12, 4  ;;  %v373_v35 = vsub.f32 %v2256_v3, %v341_v18 }
  0x2a   : > { %3513 = vst [vmem:[#allocation13_spill] sm:$0xff] %v2272_v11  ;;  %v351_v29 = vrot.slane %v2278_v15, 4  ;;  %v352_v30 = vrot.slane %v2280_v16, 4  ;;  %v353_v33 = vrot.slane %v2285_v20, 4  ;;  %v374_v36 = vsub.f32 %v2258_v4, %v342_v19  ;;  %v2343_v62 = vld [vmem:[%s2244_s12] sm:$0xff]  ;;  %s3729_s18 = smov (!%p283_p13, %s2131_s18), 1 }
  0x2b   : > { %3514 = vst [vmem:[#allocation14_spill] sm:$0xff] %v2274_v12  ;;  %v375_v37 = vsub.f32 %v2260_v5, %v343_v21  ;;  %v376_v38 = vsub.f32 %v2262_v6, %v344_v22  ;;  %v377_v39 = vsub.f32 %v2264_v7, %v345_v23  ;;  %v378_v40 = vsub.f32 %v2266_v8, %v346_v24  ;;  %v2356_v22 = vld [vmem:[%s2244_s12 + $0x8] sm:$0xff]  ;;  %s285_s11 = scalar_lea.vmem %s3387_s2, %s3729_s18  ;;  %s288_s21 = scalar_lea.vmem %s3388_s3, %s3729_s18 }
  0x2c   : > { %3515 = vst [vmem:[#allocation15_spill] sm:$0xff] %v2278_v15  ;;  %v379_v41 = vsub.f32 %v2268_v9, %v347_v25  ;;  %v380_v42 = vsub.f32 %v2270_v10, %v348_v26  ;;  %v381_v43 = vsub.f32 %v2272_v11, %v349_v27  ;;  %v382_v44 = vsub.f32 %v2274_v12, %v350_v28  ;;  %s291_s24 = scalar_lea.vmem %s3389_s4, %s3729_s18 }
  0x2d   : > { %3516 = vst [vmem:[#allocation16_spill] sm:$0xff] %v2280_v16  ;;  %v383_v45 = vsub.f32 %v2278_v15, %v351_v29  ;;  %v384_v46 = vsub.f32 %v2280_v16, %v352_v30  ;;  %v2313_v47 = vand.u32 2147483647, %v370_v31  ;;  %v2315_v48 = vand.u32 2147483647, %v371_v32 }
  0x2e   : > { %3517 = vst [vmem:[#allocation17_spill] sm:$0xff] %v2285_v20  ;;  %v385_v49 = vsub.f32 %v2285_v20, %v353_v33  ;;  %v2318_v50 = vand.u32 2147483647, %v372_v34  ;;  %v2320_v51 = vand.u32 2147483647, %v373_v35  ;;  %vm320_vm5 = vcmp.gt.f32.partialorder %v2343_v62, 0.0 }
  0x2f   : > { %v2322_v52 = vand.u32 2147483647, %v374_v36  ;;  %v2324_v53 = vand.u32 2147483647, %v375_v37  ;;  %v2326_v54 = vand.u32 2147483647, %v376_v38 }
  0x30   : > { %v2328_v55 = vand.u32 2147483647, %v377_v39  ;;  %v2330_v56 = vand.u32 2147483647, %v378_v40  ;;  %v2332_v57 = vand.u32 2147483647, %v379_v41 }
  0x31   : > { %v2334_v58 = vand.u32 2147483647, %v380_v42  ;;  %v2336_v59 = vand.u32 2147483647, %v381_v43  ;;  %v2338_v60 = vand.u32 2147483647, %v382_v44 }
  0x32   : > { %v2340_v61 = vand.u32 2147483647, %v383_v45  ;;  %3518 = vst [vmem:[#allocation18_spill] sm:$0xff] %v2343_v62  ;;  %v2345_v63 = vand.u32 2147483647, %v384_v46  ;;  %v418_v14 = vmul.f32 0.5, %v2313_v47 }
  0x33   : > { %v2347_v13 = vand.u32 2147483647, %v385_v49  ;;  %vm402_vm0 = vcmp.lt.f32.partialorder %v2313_v47, 1.0  ;;  %v419_v17 = vmul.f32 0.5, %v2315_v48  ;;  %v420_v18 = vmul.f32 0.5, %v2318_v50  ;;  %3519 = vst [vmem:[#allocation19_spill] sm:$0xff] %v2356_v22 }
  0x34   : > { %v421_v19 = vmul.f32 0.5, %v2320_v51  ;;  %v422_v21 = vmul.f32 0.5, %v2322_v52  ;;  %vm403_vm1 = vcmp.lt.f32.partialorder %v2315_v48, 1.0  ;;  %vm404_vm2 = vcmp.lt.f32.partialorder %v2318_v50, 1.0 }
  0x35   : > { %vm405_vm3 = vcmp.lt.f32.partialorder %v2320_v51, 1.0  ;;  %vm406_vm4 = vcmp.lt.f32.partialorder %v2322_v52, 1.0  ;;  %v423_v23 = vmul.f32 0.5, %v2324_v53  ;;  %v424_v24 = vmul.f32 0.5, %v2326_v54 }
  0x36   : > { %v425_v25 = vmul.f32 0.5, %v2328_v55  ;;  %v426_v26 = vmul.f32 0.5, %v2330_v56  ;;  %vm407_vm6 = vcmp.lt.f32.partialorder %v2324_v53, 1.0  ;;  %vm408_vm7 = vcmp.lt.f32.partialorder %v2326_v54, 1.0 }
  0x37   : > { %vm409_vm8 = vcmp.lt.f32.partialorder %v2328_v55, 1.0  ;;  %v427_v27 = vmul.f32 0.5, %v2332_v57  ;;  %v428_v28 = vmul.f32 0.5, %v2334_v58  ;;  %v429_v29 = vmul.f32 0.5, %v2336_v59 }
  0x38   : > { %v430_v30 = vmul.f32 0.5, %v2338_v60  ;;  %vm410_vm9 = vcmp.lt.f32.partialorder %v2330_v56, 1.0  ;;  %vm412_vm11 = vcmp.lt.f32.partialorder %v2334_v58, 1.0  ;;  %vm413_vm12 = vcmp.lt.f32.partialorder %v2336_v59, 1.0 }
  0x39   : > { %v431_v31 = vmul.f32 0.5, %v2340_v61  ;;  %v432_v32 = vmul.f32 0.5, %v2345_v63  ;;  %v433_v33 = vmul.f32 0.5, %v2347_v13  ;;  %v434_v34 = vmul.f32 %v418_v14, %v2313_v47 }
  0x3a   : > { %vm414_vm14 = vcmp.lt.f32.partialorder %v2338_v60, 1.0  ;;  %vm415_vm15 = vcmp.lt.f32.partialorder %v2340_v61, 1.0  ;;  %vm416_vm10 = vcmp.lt.f32.partialorder %v2345_v63, 1.0  ;;  %v435_v35 = vmul.f32 %v419_v17, %v2315_v48 }
  0x3b   : > { %v436_v36 = vmul.f32 %v420_v18, %v2318_v50  ;;  %v437_v37 = vmul.f32 %v421_v19, %v2320_v51  ;;  %v438_v38 = vmul.f32 %v422_v21, %v2322_v52  ;;  %v439_v39 = vmul.f32 %v423_v23, %v2324_v53 }
  0x3c   : > { %v440_v40 = vmul.f32 %v424_v24, %v2326_v54  ;;  %v441_v41 = vmul.f32 %v425_v25, %v2328_v55  ;;  %v442_v42 = vmul.f32 %v426_v26, %v2330_v56  ;;  %vm417_vm13 = vcmp.lt.f32.partialorder %v2347_v13, 1.0 }
  0x3d   : > { %v443_v43 = vmul.f32 %v427_v27, %v2332_v57  ;;  %v444_v44 = vmul.f32 %v428_v28, %v2334_v58  ;;  %v445_v45 = vmul.f32 %v429_v29, %v2336_v59  ;;  %v446_v46 = vmul.f32 %v430_v30, %v2338_v60 }
  0x3e   : > { %v447_v49 = vmul.f32 %v431_v31, %v2340_v61  ;;  %v448_v14 = vmul.f32 %v432_v32, %v2345_v63  ;;  %v449_v17 = vmul.f32 %v433_v33, %v2347_v13  ;;  %v1859_v18 = vadd.f32 -0.5, %v2313_v47 }
  0x3f   : > { %v1860_v19 = vadd.f32 -0.5, %v2315_v48  ;;  %v1861_v21 = vadd.f32 -0.5, %v2318_v50  ;;  %v1862_v23 = vadd.f32 -0.5, %v2320_v51  ;;  %v1863_v24 = vadd.f32 -0.5, %v2322_v52 }
  0x40   : > { %v1864_v25 = vadd.f32 -0.5, %v2324_v53  ;;  %v1865_v26 = vadd.f32 -0.5, %v2326_v54  ;;  %v1866_v27 = vadd.f32 -0.5, %v2328_v55  ;;  %v1867_v28 = vadd.f32 -0.5, %v2330_v56 }
  0x41   : > { %v1868_v29 = vadd.f32 -0.5, %v2332_v57  ;;  %v1869_v30 = vadd.f32 -0.5, %v2334_v58  ;;  %v1870_v31 = vadd.f32 -0.5, %v2336_v59  ;;  %v1871_v32 = vadd.f32 -0.5, %v2338_v60 }
  0x42   : > { %v1872_v33 = vadd.f32 -0.5, %v2340_v61  ;;  %v1873_v20 = vadd.f32 -0.5, %v2345_v63  ;;  %v1874_v16 = vadd.f32 -0.5, %v2347_v13  ;;  %v2420_v15 = vsel %vm402_vm0, %v434_v34, %v1859_v18 }
  0x43   : > { %v2424_v12 = vsel %vm403_vm1, %v435_v35, %v1860_v19  ;;  %v2428_v11 = vsel %vm404_vm2, %v436_v36, %v1861_v21  ;;  %v2432_v10 = vsel %vm405_vm3, %v437_v37, %v1862_v23  ;;  %v2436_v9 = vsel %vm406_vm4, %v438_v38, %v1863_v24 }
  0x44   : > { %v2440_v47 = vsel %vm407_vm6, %v439_v39, %v1864_v25  ;;  %v2444_v48 = vsel %vm408_vm7, %v440_v40, %v1865_v26  ;;  %v2448_v50 = vsel %vm409_vm8, %v441_v41, %v1866_v27  ;;  %v2141_v34 = vmov 0  }
  0x45   : > { %v482_v51 = vsel %vm320_vm5, 1, %v2141_v34  ;;  %v2454_v52 = vsel %vm410_vm9, %v442_v42, %v1867_v28  ;;  %vm3520_vm0 = vcmp.lt.f32.partialorder %v2332_v57, 1.0  ;;  %v2462_v54 = vsel %vm412_vm11, %v444_v44, %v1869_v30 }
  0x46   : > { %v2458_v53 = vsel %vm3520_vm0, %v443_v43, %v1868_v29  ;;  %v2466_v55 = vsel %vm413_vm12, %v445_v45, %v1870_v31  ;;  %v2470_v35 = vsel %vm414_vm14, %v446_v46, %v1871_v32  ;;  %v2474_v56 = vsel %vm415_vm15, %v447_v49, %v1872_v33 }
  0x47   : > { %v2478_v57 = vsel %vm416_vm10, %v448_v14, %v1873_v20  ;;  %vm3521_vm1 = vcmp.gt.f32.partialorder %v2356_v22, 0.0  ;;  %v484_v36 = vperm.slane %v482_v51, 0  ;;  %v485_v37 = vperm.slane %v482_v51, 1 }
  0x48   : > { %v483_v58 = vsel %vm3521_vm1, 1, %v2141_v34  ;;  %v486_v59 = vperm.slane %v482_v51, 2  ;;  %v487_v38 = vperm.slane %v482_v51, 3  ;;  %v2484_v60 = vsel %vm417_vm13, %v449_v17, %v1874_v16 }
  0x49   : > { %v488_v39 = vperm.slane %v482_v51, 4  ;;  %v489_v40 = vperm.slane %v482_v51, 5  ;;  %vm534_vm2 = vcmask 1043456   ;;  %v490_v61 = vperm.slane %v482_v51, 6 }
  0x4a   : > { %v491_v41 = vperm.slane %v482_v51, 7  ;;  %v492_v42 = vperm.slane %v483_v58, 0  ;;  %v493_v63 = vperm.slane %v483_v58, 1  ;;  %v494_v20 = vperm.slane %v483_v58, 2 }
  0x4b   : > { %v495_v43 = vperm.slane %v483_v58, 3  ;;  %v496_v44 = vperm.slane %v483_v58, 4  ;;  %v497_v45 = vperm.slane %v483_v58, 5  ;;  %vm2486_vm3 = vcmp.eq.s32.totalorder %v484_v36, 1 }
  0x4c   : > { %vm2490_vm4 = vcmp.eq.s32.totalorder %v485_v37, 1  ;;  %vm2494_vm6 = vcmp.eq.s32.totalorder %v486_v59, 1  ;;  %vm2498_vm7 = vcmp.eq.s32.totalorder %v487_v38, 1  ;;  %v498_v14 = vperm.slane %v483_v58, 6 }
  0x4d   : > { %v499_v17 = vperm.slane %v483_v58, 7  ;;  %vm2502_vm8 = vcmp.eq.s32.totalorder %v488_v39, 1  ;;  %vm2506_vm9 = vcmp.eq.s32.totalorder %v489_v40, 1  ;;  %vm2510_vm10 = vcmp.eq.s32.totalorder %v490_v61, 1 }
  0x4e   : > { %vm2514_vm11 = vcmp.eq.s32.totalorder %v491_v41, 1  ;;  %vm2518_vm12 = vcmp.eq.s32.totalorder %v492_v42, 1  ;;  %vm2522_vm13 = vcmp.eq.s32.totalorder %v493_v63, 1  ;;  %v516_v26 = vsel %vm2486_vm3, %v2420_v15, 0.0 }
  0x4f   : > { %v517_v27 = vsel %vm2490_vm4, %v2424_v12, 0.0  ;;  %v518_v28 = vsel %vm2494_vm6, %v2428_v11, 0.0  ;;  %v519_v29 = vsel %vm2498_vm7, %v2432_v10, 0.0  ;;  %vm2538_vm14 = vcmp.eq.s32.totalorder %v494_v20, 1 }
  0x50   : > { %vm2542_vm15 = vcmp.eq.s32.totalorder %v495_v43, 1  ;;  %v520_v12 = vsel %vm2502_vm8, %v2436_v9, 0.0  ;;  %v521_v11 = vsel %vm2506_vm9, %v2440_v47, 0.0  ;;  %v522_v10 = vsel %vm2510_vm10, %v2444_v48, 0.0 }
  0x51   : > { %v523_v15 = vsel %vm2514_vm11, %v2448_v50, 0.0  ;;  %v524_v32 = vsel %vm2518_vm12, %v2454_v52, 0.0  ;;  %v525_v9 = vsel %vm2522_vm13, %v2458_v53, 0.0  ;;  %vm2564_vm0 = vcmp.eq.s32.totalorder %v496_v44, 1 }
  0x52   : > { %vm2568_vm1 = vcmp.eq.s32.totalorder %v497_v45, 1  ;;  %vm2572_vm3 = vcmp.eq.s32.totalorder %v498_v14, 1  ;;  %vm2576_vm4 = vcmp.eq.s32.totalorder %v499_v17, 1  ;;  %v535_v34 = vsel %vm534_vm2, %v516_v26, 0.0 }
  0x53   : > { %v542_v51 = vsel %vm534_vm2, %v517_v27, 0.0  ;;  %v549_v52 = vsel %vm534_vm2, %v518_v28, 0.0  ;;  %v556_v53 = vsel %vm534_vm2, %v519_v29, 0.0  ;;  %v536_v58 = vrot.slane %v535_v34, 4 }
  0x54   : > { %v543_v36 = vrot.slane %v542_v51, 4  ;;  %v550_v37 = vrot.slane %v549_v52, 4  ;;  %v557_v59 = vrot.slane %v556_v53, 4  ;;  %v563_v38 = vsel %vm534_vm2, %v520_v12, 0.0 }
  0x55   : > { %v570_v39 = vsel %vm534_vm2, %v521_v11, 0.0  ;;  %v577_v40 = vsel %vm534_vm2, %v522_v10, 0.0  ;;  %v584_v61 = vsel %vm534_vm2, %v523_v15, 0.0  ;;  %v537_v41 = vadd.f32 %v536_v58, %v535_v34 }
  0x56   : > { %v544_v42 = vadd.f32 %v543_v36, %v542_v51  ;;  %v551_v63 = vadd.f32 %v550_v37, %v549_v52  ;;  %v558_v20 = vadd.f32 %v557_v59, %v556_v53  ;;  %v564_v43 = vrot.slane %v563_v38, 4 }
  0x57   : > { %v571_v44 = vrot.slane %v570_v39, 4  ;;  %v578_v45 = vrot.slane %v577_v40, 4  ;;  %v585_v46 = vrot.slane %v584_v61, 4  ;;  %v538_v49 = vrot.slane %v537_v41, 2 }
  0x58   : > { %v545_v16 = vrot.slane %v544_v42, 2  ;;  %v552_v13 = vrot.slane %v551_v63, 2  ;;  %v559_v14 = vrot.slane %v558_v20, 2  ;;  %v565_v17 = vadd.f32 %v564_v43, %v563_v38 }
  0x59   : > { %v572_v18 = vadd.f32 %v571_v44, %v570_v39  ;;  %v579_v19 = vadd.f32 %v578_v45, %v577_v40  ;;  %v586_v21 = vadd.f32 %v585_v46, %v584_v61  ;;  %v2588_v23 = vadd.f32 %v538_v49, %v537_v41 }
  0x5a   : > { %v546_v24 = vadd.f32 %v545_v16, %v544_v42  ;;  %v553_v25 = vadd.f32 %v552_v13, %v551_v63  ;;  %v560_v26 = vadd.f32 %v559_v14, %v558_v20  ;;  %v566_v27 = vrot.slane %v565_v17, 2 }
  0x5b   : > { %v573_v28 = vrot.slane %v572_v18, 2  ;;  %v580_v29 = vrot.slane %v579_v19, 2  ;;  %v587_v12 = vrot.slane %v586_v21, 2  ;;  %v526_v11 = vsel %vm2538_vm14, %v2462_v54, 0.0 }
  0x5c   : > { %v527_v10 = vsel %vm2542_vm15, %v2466_v55, 0.0  ;;  %v547_v15 = vrot.slane %v546_v24, 1  ;;  %v554_v34 = vrot.slane %v553_v25, 1  ;;  %v567_v51 = vadd.f32 %v566_v27, %v565_v17 }
  0x5d   : > { %v574_v52 = vadd.f32 %v573_v28, %v572_v18  ;;  %v581_v53 = vadd.f32 %v580_v29, %v579_v19  ;;  %v588_v58 = vadd.f32 %v587_v12, %v586_v21  ;;  %v528_v36 = vsel %vm2564_vm0, %v2470_v35, 0.0 }
  0x5e   : > { %v529_v37 = vsel %vm2568_vm1, %v2474_v56, 0.0  ;;  %v530_v54 = vsel %vm2572_vm3, %v2478_v57, 0.0  ;;  %v531_v55 = vsel %vm2576_vm4, %v2484_v60, 0.0  ;;  %v540_v30 = vrot.slane %v2588_v23, 1 }
  0x5f   : > { %v2609_v31 = vadd.f32 %v547_v15, %v546_v24  ;;  %v2611_v59 = vadd.f32 %v554_v34, %v553_v25  ;;  %v561_v33 = vrot.slane %v560_v26, 1  ;;  %v591_v35 = vsel %vm534_vm2, %v524_v32, 0.0 }
  0x60   : > { %v598_v47 = vsel %vm534_vm2, %v525_v9, 0.0  ;;  %v605_v56 = vsel %vm534_vm2, %v526_v11, 0.0  ;;  %v612_v48 = vsel %vm534_vm2, %v527_v10, 0.0  ;;  %v568_v57 = vrot.slane %v567_v51, 1 }
  0x61   : > { %v575_v38 = vrot.slane %v574_v52, 1  ;;  %v582_v39 = vrot.slane %v581_v53, 1  ;;  %v589_v50 = vrot.slane %v588_v58, 1  ;;  %v592_v60 = vrot.slane %v591_v35, 4 }
  0x62   : > { %v599_v40 = vrot.slane %v598_v47, 4  ;;  %v606_v61 = vrot.slane %v605_v56, 4  ;;  %v613_v41 = vrot.slane %v612_v48, 4  ;;  %v619_v42 = vsel %vm534_vm2, %v528_v36, 0.0 }
  0x63   : > { %v626_v63 = vsel %vm534_vm2, %v529_v37, 0.0  ;;  %v633_v32 = vsel %vm534_vm2, %v530_v54, 0.0  ;;  %v640_v9 = vsel %vm534_vm2, %v531_v55, 0.0  ;;  %v593_v20 = vadd.f32 %v592_v60, %v591_v35 }
  0x64   : > { %v600_v43 = vadd.f32 %v599_v40, %v598_v47  ;;  %v607_v44 = vadd.f32 %v606_v61, %v605_v56  ;;  %v614_v45 = vadd.f32 %v613_v41, %v612_v48  ;;  %v620_v46 = vrot.slane %v619_v42, 4 }
  0x65   : > { %v627_v49 = vrot.slane %v626_v63, 4  ;;  %v634_v16 = vrot.slane %v633_v32, 4  ;;  %v641_v13 = vrot.slane %v640_v9, 4  ;;  %v594_v14 = vrot.slane %v593_v20, 2 }
  0x66   : > { %v601_v17 = vrot.slane %v600_v43, 2  ;;  %v608_v18 = vrot.slane %v607_v44, 2  ;;  %v615_v19 = vrot.slane %v614_v45, 2  ;;  %v621_v21 = vadd.f32 %v620_v46, %v619_v42 }
  0x67   : > { %v628_v24 = vadd.f32 %v627_v49, %v626_v63  ;;  %v635_v25 = vadd.f32 %v634_v16, %v633_v32  ;;  %v642_v27 = vadd.f32 %v641_v13, %v640_v9  ;;  %v595_v28 = vadd.f32 %v594_v14, %v593_v20 }
  0x68   : > { %v602_v29 = vadd.f32 %v601_v17, %v600_v43  ;;  %v609_v12 = vadd.f32 %v608_v18, %v607_v44  ;;  %v616_v11 = vadd.f32 %v615_v19, %v614_v45  ;;  %v622_v10 = vrot.slane %v621_v21, 2 }
  0x69   : > { %v629_v15 = vrot.slane %v628_v24, 2  ;;  %v636_v34 = vrot.slane %v635_v25, 2  ;;  %v643_v36 = vrot.slane %v642_v27, 2  ;;  %v562_v37 = vadd.f32 %v561_v33, %v560_v26 }
  0x6a   : > { %v596_v54 = vrot.slane %v595_v28, 1  ;;  %v603_v55 = vrot.slane %v602_v29, 1  ;;  %v610_v35 = vrot.slane %v609_v12, 1  ;;  %v623_v47 = vadd.f32 %v622_v10, %v621_v21 }
  0x6b   : > { %v630_v56 = vadd.f32 %v629_v15, %v628_v24  ;;  %v637_v48 = vadd.f32 %v636_v34, %v635_v25  ;;  %v644_v60 = vadd.f32 %v643_v36, %v642_v27  ;;  %v569_v40 = vadd.f32 %v568_v57, %v567_v51 }
  0x6c   : > { %v576_v61 = vadd.f32 %v575_v38, %v574_v52  ;;  %v583_v41 = vadd.f32 %v582_v39, %v581_v53  ;;  %v617_v42 = vrot.slane %v616_v11, 1  ;;  %v590_v63 = vadd.f32 %v589_v50, %v588_v58 }
  0x6d   : > { %v624_v32 = vrot.slane %v623_v47, 1  ;;  %v631_v9 = vrot.slane %v630_v56, 1  ;;  %v638_v20 = vrot.slane %v637_v48, 1  ;;  %v541_v43 = vadd.f32 %v540_v30, %v2588_v23 }
  0x6e   : > { %v597_v44 = vadd.f32 %v596_v54, %v595_v28  ;;  %v604_v45 = vadd.f32 %v603_v55, %v602_v29  ;;  %v645_v26 = vrot.slane %v644_v60, 1  ;;  %v611_v33 = vadd.f32 %v610_v35, %v609_v12 }
  0x6f   : > { %v663_v46 = vrot.slane %v2609_v31, 7  ;;  %v664_v49 = vrot.slane %v2611_v59, 6  ;;  %v665_v16 = vrot.slane %v562_v37, 5  ;;  %v618_v13 = vadd.f32 %v617_v42, %v616_v11 }
  0x70   : > { %v625_v51 = vadd.f32 %v624_v32, %v623_v47  ;;  %v666_v52 = vrot.slane %v569_v40, 4  ;;  %v667_v53 = vrot.slane %v576_v61, 3  ;;  %v632_v57 = vadd.f32 %v631_v9, %v630_v56 }
  0x71   : > { %v639_v58 = vadd.f32 %v638_v20, %v637_v48  ;;  %v668_v38 = vrot.slane %v583_v41, 2  ;;  %v669_v39 = vrot.slane %v590_v63, 1  ;;  %v646_v50 = vadd.f32 %v645_v26, %v644_v60 }
  0x72   : > { %v670_v14 = vrot.slane %v604_v45, 7  ;;  %vm677_vm6 = vcmask 1040384   ;;  %vm679_vm7 = vcmask 1042434   ;;  %vm681_vm8 = vcmask 1041408  }
  0x73   : > { %v678_v23 = vsel %vm677_vm6, %v541_v43, %v663_v46  ;;  %v680_v30 = vsel %vm679_vm7, %v664_v49, %v665_v16  ;;  %vm683_vm9 = vcmask 1044484   ;;  %vm685_vm10 = vcmask 1046534  }
  0x74   : > { %v682_v31 = vsel %vm681_vm8, %v678_v23, %v680_v30  ;;  %v684_v59 = vsel %vm683_vm9, %v666_v52, %v667_v53  ;;  %vm687_vm11 = vcmask 1045508   ;;  %v671_v17 = vrot.slane %v611_v33, 6 }
  0x75   : > { %v672_v18 = vrot.slane %v618_v13, 5  ;;  %v673_v19 = vrot.slane %v625_v51, 4  ;;  %v686_v21 = vsel %vm685_vm10, %v668_v38, %v669_v39  ;;  %v674_v24 = vrot.slane %v632_v57, 3 }
  0x76   : > { %v675_v25 = vrot.slane %v639_v58, 2  ;;  %v676_v27 = vrot.slane %v646_v50, 1  ;;  %v688_v28 = vsel %vm687_vm11, %v684_v59, %v686_v21  ;;  %v690_v15 = vsel %vm677_vm6, %v597_v44, %v670_v14 }
  0x77   : > { %v689_v29 = vsel %vm534_vm2, %v682_v31, %v688_v28  ;;  %v691_v34 = vsel %vm679_vm7, %v671_v17, %v672_v18  ;;  %v693_v36 = vsel %vm683_vm9, %v673_v19, %v674_v24  ;;  %v1631_v63 = vperm.slane %v2343_v62, 0 }
  0x78   : > { %v1474_v12 = vperm.slane %v689_v29, 0  ;;  %v1475_v11 = vperm.slane %v689_v29, 1  ;;  %v1476_v10 = vperm.slane %v689_v29, 2  ;;  %v694_v37 = vsel %vm685_vm10, %v675_v25, %v676_v27 }
  0x79   : > { %v1477_v54 = vperm.slane %v689_v29, 3  ;;  %v1478_v55 = vperm.slane %v689_v29, 4  ;;  %v692_v48 = vsel %vm681_vm8, %v690_v15, %v691_v34  ;;  %v695_v60 = vsel %vm687_vm11, %v693_v36, %v694_v37 }
  0x7a   : > { %v1506_v35 = vsel %vm677_vm6, %v1474_v12, 0.0  ;;  %v1507_v47 = vsel %vm677_vm6, %v1475_v11, 0.0  ;;  %v1509_v56 = vsel %vm677_vm6, %v1476_v10, 0.0  ;;  %v1479_v61 = vperm.slane %v689_v29, 5 }
  0x7b   : > { %v1508_v40 = vadd.f32 %v1507_v47, %v1506_v35  ;;  %v1511_v41 = vsel %vm677_vm6, %v1477_v54, 0.0  ;;  %v2643_v32 = vsel %vm534_vm2, %v692_v48, %v695_v60  ;;  %v1480_v9 = vperm.slane %v689_v29, 6 }
  0x7c   : > { %v1513_v20 = vsel %vm677_vm6, %v1478_v55, 0.0  ;;  %v1632_v43 = vperm.slane %v2343_v62, 1  ;;  %v1633_v45 = vperm.slane %v2343_v62, 2  ;;  %v1481_v26 = vperm.slane %v689_v29, 7 }
  0x7d   : > { %v1510_v42 = vadd.f32 %v1509_v56, %v1508_v40  ;;  %v1515_v33 = vsel %vm677_vm6, %v1479_v61, 0.0  ;;  %v1634_v46 = vperm.slane %v2343_v62, 3  ;;  %v1482_v49 = vperm.slane %v2643_v32, 0 }
  0x7e   : > { %v1517_v13 = vsel %vm677_vm6, %v1480_v9, 0.0  ;;  %v1635_v51 = vperm.slane %v2343_v62, 4  ;;  %v1663_v52 = vsel %vm677_vm6, %v1631_v63, 0.0  ;;  %v1664_v53 = vsel %vm677_vm6, %v1632_v43, 0.0 }
  0x7f   : > { %v1512_v44 = vadd.f32 %v1511_v41, %v1510_v42  ;;  %v1665_v58 = vadd.f32 %v1664_v53, %v1663_v52  ;;  %v1666_v38 = vsel %vm677_vm6, %v1633_v45, 0.0  ;;  %v1483_v39 = vperm.slane %v2643_v32, 1 }
  0x80   : > { %v1519_v50 = vsel %vm677_vm6, %v1481_v26, 0.0  ;;  %v1636_v14 = vperm.slane %v2343_v62, 5  ;;  %v1668_v23 = vsel %vm677_vm6, %v1634_v46, 0.0  ;;  %v1484_v59 = vperm.slane %v2643_v32, 2 }
  0x81   : > { %v1514_v16 = vadd.f32 %v1513_v20, %v1512_v44  ;;  %v1667_v31 = vadd.f32 %v1666_v38, %v1665_v58  ;;  %v1521_v17 = vsel %vm677_vm6, %v1482_v49, 0.0  ;;  %v1637_v18 = vperm.slane %v2343_v62, 6 }
  0x82   : > { %v1670_v19 = vsel %vm677_vm6, %v1635_v51, 0.0  ;;  %v1485_v25 = vperm.slane %v2643_v32, 3  ;;  %v1523_v27 = vsel %vm677_vm6, %v1483_v39, 0.0  ;;  %v1638_v28 = vperm.slane %v2343_v62, 7 }
  0x83   : > { %v1516_v57 = vadd.f32 %v1515_v33, %v1514_v16  ;;  %v1669_v24 = vadd.f32 %v1668_v23, %v1667_v31  ;;  %v1672_v29 = vsel %vm677_vm6, %v1636_v14, 0.0  ;;  %v1486_v10 = vperm.slane %v2643_v32, 4 }
  0x84   : > { %v1525_v15 = vsel %vm677_vm6, %v1484_v59, 0.0  ;;  %v1639_v34 = vperm.slane %v2356_v22, 0  ;;  %v1674_v36 = vsel %vm677_vm6, %v1637_v18, 0.0  ;;  %v1487_v55 = vperm.slane %v2643_v32, 5 }
  0x85   : > { %v1518_v30 = vadd.f32 %v1517_v13, %v1516_v57  ;;  %v1671_v11 = vadd.f32 %v1670_v19, %v1669_v24  ;;  %v1527_v35 = vsel %vm677_vm6, %v1485_v25, 0.0  ;;  %v1640_v47 = vperm.slane %v2356_v22, 1 }
  0x86   : > { %v1676_v56 = vsel %vm677_vm6, %v1638_v28, 0.0  ;;  %v1488_v40 = vperm.slane %v2643_v32, 6  ;;  %v1529_v61 = vsel %vm677_vm6, %v1486_v10, 0.0  ;;  %v1641_v41 = vperm.slane %v2356_v22, 2 }
  0x87   : > { %v1520_v21 = vadd.f32 %v1519_v50, %v1518_v30  ;;  %v1673_v54 = vadd.f32 %v1672_v29, %v1671_v11  ;;  %v1678_v42 = vsel %vm677_vm6, %v1639_v34, 0.0  ;;  %v1489_v20 = vperm.slane %v2643_v32, 7 }
  0x88   : > { %v1531_v43 = vsel %vm677_vm6, %v1487_v55, 0.0  ;;  %v1642_v44 = vperm.slane %v2356_v22, 3  ;;  %v1680_v45 = vsel %vm677_vm6, %v1640_v47, 0.0  ;;  %v1533_v46 = vsel %vm677_vm6, %v1488_v40, 0.0  ;;  %v3559_v40 = vld [vmem:[#allocation16_spill] sm:$0xff] }
  0x89   : > { %v1522_v12 = vadd.f32 %v1521_v17, %v1520_v21  ;;  %v1675_v60 = vadd.f32 %v1674_v36, %v1673_v54  ;;  %v1643_v49 = vperm.slane %v2356_v22, 4  ;;  %v1682_v16 = vsel %vm677_vm6, %v1641_v41, 0.0  ;;  %v3555_v36 = vld [vmem:[#allocation12_spill] sm:$0xff]  ;;  %v3556_v54 = vld [vmem:[#allocation13_spill] sm:$0xff] }
  0x8a   : > { %v1535_v52 = vsel %vm677_vm6, %v1489_v20, 0.0  ;;  %v1644_v32 = vperm.slane %v2356_v22, 5  ;;  %v1684_v53 = vsel %vm677_vm6, %v1642_v44, 0.0  ;;  %v1645_v38 = vperm.slane %v2356_v22, 6  ;;  %v3560_v41 = vld [vmem:[#allocation17_spill] sm:$0xff] }
  0x8b   : > { %v1524_v37 = vadd.f32 %v1523_v27, %v1522_v12  ;;  %v1677_v9 = vadd.f32 %v1676_v56, %v1675_v60  ;;  %v1686_v39 = vsel %vm677_vm6, %v1643_v49, 0.0  ;;  %v1646_v14 = vperm.slane %v2356_v22, 7 }
  0x8c   : > { %v1688_v30 = vsel %vm677_vm6, %v1644_v32, 0.0  ;;  %v1690_v59 = vsel %vm677_vm6, %v1645_v38, 0.0  ;;  %v703_v19 = vmul.f32 0.5, %v2250_v0  ;;  %v704_v21 = vmul.f32 0.5, %v2252_v1 }
  0x8d   : > { %v1526_v48 = vadd.f32 %v1525_v15, %v1524_v37  ;;  %v1679_v33 = vadd.f32 %v1678_v42, %v1677_v9  ;;  %v1692_v18 = vsel %vm677_vm6, %v1646_v14, 0.0  ;;  %v705_v24 = vmul.f32 0.5, %v2254_v2  ;;  %v3554_v15 = vld [vmem:[#allocation11_spill] sm:$0xff] }
  0x8e   : > { %v706_v25 = vmul.f32 0.5, %v2256_v3  ;;  %v707_v27 = vmul.f32 0.5, %v2258_v4  ;;  %v708_v28 = vmul.f32 0.5, %v2260_v5  ;;  %v709_v12 = vmul.f32 0.5, %v2262_v6 }
  0x8f   : > { %v1528_v63 = vadd.f32 %v1527_v35, %v1526_v48  ;;  %v1681_v51 = vadd.f32 %v1680_v45, %v1679_v33  ;;  %v710_v11 = vmul.f32 0.5, %v2264_v7  ;;  %v711_v10 = vmul.f32 0.5, %v2266_v8  ;;  %v3557_v35 = vld [vmem:[#allocation14_spill] sm:$0xff]  ;;  %v3558_v48 = vld [vmem:[#allocation15_spill] sm:$0xff] }
  0x90   : > { %v712_v34 = vmul.f32 0.5, %v3554_v15  ;;  %v713_v37 = vmul.f32 0.5, %v3555_v36  ;;  %v714_v55 = vmul.f32 0.5, %v3556_v54  ;;  %v715_v47 = vmul.f32 0.5, %v3557_v35 }
  0x91   : > { %v1530_v26 = vadd.f32 %v1529_v61, %v1528_v63  ;;  %v1683_v58 = vadd.f32 %v1682_v16, %v1681_v51  ;;  %v716_v60 = vmul.f32 0.5, %v3558_v48  ;;  %v717_v61 = vmul.f32 0.5, %v3559_v40 }
  0x92   : > { %v718_v42 = vmul.f32 0.5, %v3560_v41  ;;  %v735_v63 = vrot.slane %v703_v19, 2  ;;  %v736_v9 = vrot.slane %v704_v21, 2  ;;  %v737_v20 = vrot.slane %v705_v24, 2 }
  0x93   : > { %v1532_v13 = vadd.f32 %v1531_v43, %v1530_v26  ;;  %v1685_v23 = vadd.f32 %v1684_v53, %v1683_v58  ;;  %v738_v43 = vrot.slane %v706_v25, 2  ;;  %v739_v44 = vrot.slane %v707_v27, 2 }
  0x94   : > { %v740_v45 = vrot.slane %v708_v28, 2  ;;  %v741_v26 = vrot.slane %v709_v12, 2  ;;  %v742_v33 = vrot.slane %v710_v11, 2  ;;  %v744_v49 = vrot.slane %v712_v34, 2 }
  0x95   : > { %v1534_v57 = vadd.f32 %v1533_v46, %v1532_v13  ;;  %v1687_v31 = vadd.f32 %v1686_v39, %v1685_v23  ;;  %v743_v46 = vrot.slane %v711_v10, 2  ;;  %v745_v16 = vrot.slane %v713_v37, 2 }
  0x96   : > { %v746_v13 = vrot.slane %v714_v55, 2  ;;  %v747_v51 = vrot.slane %v715_v47, 2  ;;  %v749_v32 = vrot.slane %v717_v61, 2  ;;  %v750_v53 = vrot.slane %v718_v42, 2 }
  0x97   : > { %v1536_v50 = vadd.f32 %v1535_v52, %v1534_v57  ;;  %v1689_v17 = vadd.f32 %v1688_v30, %v1687_v31  ;;  %v748_v52 = vrot.slane %v716_v60, 2  ;;  %v2713_v57 = vsub.f32 %v2250_v0, %v735_v63 }
  0x98   : > { %v2716_v58 = vsub.f32 %v2252_v1, %v736_v9  ;;  %v2719_v38 = vsub.f32 %v2254_v2, %v737_v20  ;;  %v2722_v39 = vsub.f32 %v2256_v3, %v738_v43  ;;  %v2728_v14 = vsub.f32 %v2260_v5, %v740_v45 }
  0x99   : > { %1537 = vadd.xlane.f32.xlu0 %v1536_v50  ;;  %v1691_v29 = vadd.f32 %v1690_v59, %v1689_v17  ;;  %3561 = vst [vmem:[#allocation11_spill] sm:$0xff] %v2713_v57  ;;  %v2725_v50 = vsub.f32 %v2258_v4, %v739_v44  ;;  %v2731_v23 = vsub.f32 %v2262_v6, %v741_v26 }
  0x9a   : > { %3562 = vst [vmem:[#allocation12_spill] sm:$0xff] %v2716_v58  ;;  %v2734_v30 = vsub.f32 %v2264_v7, %v742_v33  ;;  %v2737_v31 = vsub.f32 %v2266_v8, %v743_v46  ;;  %v2740_v59 = vsub.f32 %v3554_v15, %v744_v49  ;;  %v2743_v17 = vsub.f32 %v3555_v36, %v745_v16 }
  0x9b   : > { %v1693_v56 = vadd.f32 %v1692_v18, %v1691_v29  ;;  %3563 = vst [vmem:[#allocation13_spill] sm:$0xff] %v2719_v38  ;;  %v2746_v18 = vsub.f32 %v3556_v54, %v746_v13  ;;  %v2749_v19 = vsub.f32 %v3557_v35, %v747_v51  ;;  %v2752_v21 = vsub.f32 %v3558_v48, %v748_v52 }
  0x9c   : > { %3564 = vst [vmem:[#allocation14_spill] sm:$0xff] %v2722_v39  ;;  %v2755_v24 = vsub.f32 %v3559_v40, %v749_v32  ;;  %v2758_v25 = vsub.f32 %v3560_v41, %v750_v53  ;;  %v2761_v27 = vadd.f32 %v735_v63, %v2250_v0  ;;  %v2764_v28 = vadd.f32 %v736_v9, %v2252_v1 }
  0x9d   : > { %1694 = vadd.xlane.f32.xlu1 %v1693_v56  ;;  %3565 = vst [vmem:[#allocation15_spill] sm:$0xff] %v2725_v50  ;;  %v2767_v29 = vadd.f32 %v737_v20, %v2254_v2  ;;  %v2770_v12 = vadd.f32 %v738_v43, %v2256_v3  ;;  %v2773_v11 = vadd.f32 %v739_v44, %v2258_v4 }
  0x9e   : > { %3566 = vst [vmem:[#allocation16_spill] sm:$0xff] %v2728_v14  ;;  %v2776_v10 = vadd.f32 %v740_v45, %v2260_v5  ;;  %v2779_v34 = vadd.f32 %v741_v26, %v2262_v6  ;;  %v2782_v0 = vadd.f32 %v742_v33, %v2264_v7  ;;  %v2785_v1 = vadd.f32 %v743_v46, %v2266_v8 }
  0x9f   : > { %3567 = vst [vmem:[#allocation17_spill] sm:$0xff] %v2731_v23  ;;  %v2788_v2 = vadd.f32 %v744_v49, %v3554_v15  ;;  %v2791_v3 = vadd.f32 %v745_v16, %v3555_v36  ;;  %v2794_v4 = vadd.f32 %v746_v13, %v3556_v54  ;;  %v2797_v5 = vadd.f32 %v747_v51, %v3557_v35 }
  0xa0   : > { %3568 = vst [vmem:[#allocation20_spill] sm:$0xff] %v2734_v30  ;;  %v2800_v6 = vadd.f32 %v748_v52, %v3558_v48  ;;  %v2803_v7 = vadd.f32 %v749_v32, %v3559_v40  ;;  %v2806_v8 = vadd.f32 %v750_v53, %v3560_v41  ;;  %v799_v15 = vsub.f32 %v2761_v27, %v2713_v57 }
  0xa1   : > { %3569 = vst [vmem:[#allocation21_spill] sm:$0xff] %v2737_v31  ;;  %v800_v36 = vsub.f32 %v2764_v28, %v2716_v58  ;;  %v801_v37 = vsub.f32 %v2767_v29, %v2719_v38  ;;  %v802_v54 = vsub.f32 %v2770_v12, %v2722_v39  ;;  %v803_v55 = vsub.f32 %v2773_v11, %v2725_v50 }
  0xa2   : > { %3570 = vst [vmem:[#allocation22_spill] sm:$0xff] %v2740_v59  ;;  %v804_v35 = vsub.f32 %v2776_v10, %v2728_v14  ;;  %v805_v47 = vsub.f32 %v2779_v34, %v2731_v23  ;;  %v806_v56 = vsub.f32 %v2782_v0, %v2734_v30  ;;  %v807_v48 = vsub.f32 %v2785_v1, %v2737_v31 }
  0xa3   : > { %3571 = vst [vmem:[#allocation23_spill] sm:$0xff] %v2743_v17  ;;  %v808_v60 = vsub.f32 %v2788_v2, %v2740_v59  ;;  %v809_v40 = vsub.f32 %v2791_v3, %v2743_v17  ;;  %v810_v61 = vsub.f32 %v2794_v4, %v2746_v18  ;;  %v811_v41 = vsub.f32 %v2797_v5, %v2749_v19 }
  0xa4   : > { %3572 = vst [vmem:[#allocation24_spill] sm:$0xff] %v2746_v18  ;;  %v812_v42 = vsub.f32 %v2800_v6, %v2752_v21  ;;  %v813_v63 = vsub.f32 %v2803_v7, %v2755_v24  ;;  %v814_v9 = vsub.f32 %v2806_v8, %v2758_v25  ;;  %v831_v20 = vrot.slane %v799_v15, 1 }
  0xa5   : > { %3573 = vst [vmem:[#allocation25_spill] sm:$0xff] %v2749_v19  ;;  %v832_v43 = vrot.slane %v800_v36, 1  ;;  %v833_v44 = vrot.slane %v801_v37, 1  ;;  %v834_v45 = vrot.slane %v802_v54, 1  ;;  %v835_v26 = vrot.slane %v803_v55, 1 }
  0xa6   : > { %3574 = vst [vmem:[#allocation26_spill] sm:$0xff] %v2752_v21  ;;  %v836_v33 = vrot.slane %v804_v35, 1  ;;  %v837_v46 = vrot.slane %v805_v47, 1  ;;  %v838_v49 = vrot.slane %v806_v56, 1  ;;  %v839_v16 = vrot.slane %v807_v48, 1 }
  0xa7   : > { %3575 = vst [vmem:[#allocation27_spill] sm:$0xff] %v2755_v24  ;;  %v840_v13 = vrot.slane %v808_v60, 1  ;;  %v841_v51 = vrot.slane %v809_v40, 1  ;;  %v842_v52 = vrot.slane %v810_v61, 1  ;;  %v843_v32 = vrot.slane %v811_v41, 1 }
  0xa8   : > { %3576 = vst [vmem:[#allocation28_spill] sm:$0xff] %v2758_v25  ;;  %v844_v53 = vrot.slane %v812_v42, 1  ;;  %v845_v22 = vrot.slane %v813_v63, 1  ;;  %v846_v62 = vrot.slane %v814_v9, 1  ;;  %v2840_v24 = vmul.f32 %v831_v20, %v799_v15 }
  0xa9   : > { %3577 = vst [vmem:[#allocation29_spill] sm:$0xff] %v2776_v10  ;;  %v2842_v21 = vmul.f32 %v832_v43, %v800_v36  ;;  %v2844_v25 = vmul.f32 %v833_v44, %v801_v37  ;;  %v2846_v19 = vmul.f32 %v834_v45, %v802_v54  ;;  %v2848_v18 = vmul.f32 %v835_v26, %v803_v55 }
  0xaa   : > { %3578 = vst [vmem:[#allocation30_spill] sm:$0xff] %v2779_v34  ;;  %v2850_v17 = vmul.f32 %v836_v33, %v804_v35  ;;  %v2852_v59 = vmul.f32 %v837_v46, %v805_v47  ;;  %v2854_v31 = vmul.f32 %v838_v49, %v806_v56  ;;  %v2856_v30 = vmul.f32 %v839_v16, %v807_v48 }
  0xab   : > { %3579 = vst [vmem:[#allocation31_spill] sm:$0xff] %v2782_v0  ;;  %v2858_v23 = vmul.f32 %v840_v13, %v808_v60  ;;  %v2860_v15 = vmul.f32 %v841_v51, %v809_v40  ;;  %v2862_v36 = vmul.f32 %v842_v52, %v810_v61  ;;  %v2864_v37 = vmul.f32 %v843_v32, %v811_v41 }
  0xac   : > { %3580 = vst [vmem:[#allocation32_spill] sm:$0xff] %v2785_v1  ;;  %v2866_v54 = vmul.f32 %v844_v53, %v812_v42  ;;  %v2868_v55 = vmul.f32 %v845_v22, %v813_v63  ;;  %v2870_v35 = vmul.f32 %v846_v62, %v814_v9  ;;  %v3440_v47 = vrot.slane %v2761_v27, 4 }
  0xad   : > { %3581 = vst [vmem:[#allocation33_spill] sm:$0xff] %v2788_v2  ;;  %v3438_v56 = vrot.slane %v2764_v28, 4  ;;  %v3437_v48 = vrot.slane %v2767_v29, 4  ;;  %v3435_v60 = vrot.slane %v2770_v12, 4  ;;  %v3434_v40 = vrot.slane %v2773_v11, 4 }
  0xae   : > { %3582 = vst [vmem:[#allocation34_spill] sm:$0xff] %v2791_v3  ;;  %v3432_v61 = vrot.slane %v2776_v10, 4  ;;  %v3426_v41 = vrot.slane %v2779_v34, 4  ;;  %v3427_v42 = vrot.slane %v2782_v0, 4  ;;  %v3428_v22 = vrot.slane %v2785_v1, 4 }
  0xaf   : > { %3583 = vst [vmem:[#allocation35_spill] sm:$0xff] %v2794_v4  ;;  %v3429_v62 = vrot.slane %v2788_v2, 4  ;;  %v3430_v63 = vrot.slane %v2791_v3, 4  ;;  %v3431_v9 = vrot.slane %v2794_v4, 4  ;;  %v3433_v20 = vrot.slane %v2797_v5, 4 }
  0xb0   : > { %3584 = vst [vmem:[#allocation36_spill] sm:$0xff] %v2797_v5  ;;  %v3436_v43 = vrot.slane %v2800_v6, 4  ;;  %v3439_v44 = vrot.slane %v2803_v7, 4  ;;  %v3447_v45 = vrot.slane %v2806_v8, 4  ;;  %v2891_v26 = vmin.f32 %v2761_v27, %v3440_v47  ;;  %v3589_v47 = vld [vmem:[#allocation20_spill] sm:$0xff] }
  0xb1   : > { %3585 = vst [vmem:[#allocation37_spill] sm:$0xff] %v2800_v6  ;;  %v2896_v33 = vmin.f32 %v2764_v28, %v3438_v56  ;;  %v2901_v46 = vmin.f32 %v2767_v29, %v3437_v48  ;;  %v2906_v49 = vmin.f32 %v2770_v12, %v3435_v60  ;;  %v2911_v16 = vmin.f32 %v2773_v11, %v3434_v40  ;;  %v3588_v56 = vld [vmem:[#allocation17_spill] sm:$0xff] }
  0xb2   : > { %3586 = vst [vmem:[#allocation38_spill] sm:$0xff] %v2803_v7  ;;  %v2916_v13 = vmin.f32 %v2776_v10, %v3432_v61  ;;  %v2921_v51 = vmin.f32 %v2779_v34, %v3426_v41  ;;  %v2926_v52 = vmin.f32 %v2782_v0, %v3427_v42  ;;  %v2931_v32 = vmin.f32 %v2785_v1, %v3428_v22  ;;  %v3595_v1 = vld [vmem:[#allocation26_spill] sm:$0xff]  ;;  %v3596_v0 = vld [vmem:[#allocation27_spill] sm:$0xff]  ;;  %v3597_v34 = vld [vmem:[#allocation28_spill] sm:$0xff] }
  0xb3   : > { %3587 = vst [vmem:[#allocation39_spill] sm:$0xff] %v2806_v8  ;;  %v2936_v53 = vmin.f32 %v2788_v2, %v3429_v62  ;;  %v2941_v41 = vmin.f32 %v2791_v3, %v3430_v63  ;;  %v2946_v42 = vmin.f32 %v2794_v4, %v3431_v9  ;;  %v2951_v22 = vmin.f32 %v2797_v5, %v3433_v20  ;;  %v3592_v4 = vld [vmem:[#allocation23_spill] sm:$0xff]  ;;  %v3593_v3 = vld [vmem:[#allocation24_spill] sm:$0xff]  ;;  %v3594_v2 = vld [vmem:[#allocation25_spill] sm:$0xff] }
  0xb4   : > { %v2956_v62 = vmin.f32 %v2800_v6, %v3436_v43  ;;  %v2961_v63 = vmin.f32 %v2803_v7, %v3439_v44  ;;  %v2966_v9 = vmin.f32 %v2806_v8, %v3447_v45  ;;  %v3590_v6 = vld [vmem:[#allocation21_spill] sm:$0xff]  ;;  %v3591_v45 = vld [vmem:[#allocation22_spill] sm:$0xff]  ;;  %v3598_v44 = vrot.slane %v2713_v57, 4 }
  0xb5   : > { %v3599_v5 = vrot.slane %v2716_v58, 4  ;;  %v3600_v61 = vrot.slane %v2719_v38, 4  ;;  %v3601_v40 = vrot.slane %v2722_v39, 4  ;;  %v3602_v43 = vrot.slane %v2725_v50, 4 }
  0xb6   : > { %v991_v7 = vmax.f32 %v2713_v57, %v3598_v44  ;;  %v3603_v10 = vrot.slane %v2728_v14, 4  ;;  %v3604_v57 = vrot.slane %v3588_v56, 4 }
  0xb7   : > { %v992_v8 = vmax.f32 %v2716_v58, %v3599_v5  ;;  %v993_v20 = vmax.f32 %v2719_v38, %v3600_v61  ;;  %v994_v60 = vmax.f32 %v2722_v39, %v3601_v40  ;;  %v995_v48 = vmax.f32 %v2725_v50, %v3602_v43 }
  0xb8   : > { %v996_v44 = vmax.f32 %v2728_v14, %v3603_v10  ;;  %v997_v5 = vmax.f32 %v3588_v56, %v3604_v57  ;;  %v3605_v58 = vrot.slane %v3589_v47, 4  ;;  %v3606_v38 = vrot.slane %v3590_v6, 4 }
  0xb9   : > { %v3607_v39 = vrot.slane %v3591_v45, 4  ;;  %v3608_v50 = vrot.slane %v3592_v4, 4  ;;  %v3609_v14 = vrot.slane %v3593_v3, 4  ;;  %v3610_v56 = vrot.slane %v3594_v2, 4 }
  0xba   : > { %v998_v61 = vmax.f32 %v3589_v47, %v3605_v58  ;;  %v999_v40 = vmax.f32 %v3590_v6, %v3606_v38  ;;  %v3611_v47 = vrot.slane %v3595_v1, 4  ;;  %v3612_v6 = vrot.slane %v3596_v0, 4 }
  0xbb   : > { %v1000_v43 = vmax.f32 %v3591_v45, %v3607_v39  ;;  %v1001_v10 = vmax.f32 %v3592_v4, %v3608_v50  ;;  %v1002_v57 = vmax.f32 %v3593_v3, %v3609_v14  ;;  %v1003_v58 = vmax.f32 %v3594_v2, %v3610_v56 }
  0xbc   : > { %v1004_v38 = vmax.f32 %v3595_v1, %v3611_v47  ;;  %v1005_v39 = vmax.f32 %v3596_v0, %v3612_v6  ;;  %v3613_v45 = vrot.slane %v3597_v34, 4  ;;  %v1007_v4 = vsub.f32 %v2891_v26, %v991_v7 }
  0xbd   : > { %v1008_v14 = vsub.f32 %v2896_v33, %v992_v8  ;;  %v1009_v3 = vsub.f32 %v2901_v46, %v993_v20  ;;  %v1010_v56 = vsub.f32 %v2906_v49, %v994_v60  ;;  %v1011_v2 = vsub.f32 %v2911_v16, %v995_v48 }
  0xbe   : > { %v1006_v50 = vmax.f32 %v3597_v34, %v3613_v45  ;;  %v1012_v47 = vsub.f32 %v2916_v13, %v996_v44  ;;  %v1013_v1 = vsub.f32 %v2921_v51, %v997_v5  ;;  %v1014_v6 = vsub.f32 %v2926_v52, %v998_v61 }
  0xbf   : > { %v1015_v0 = vsub.f32 %v2931_v32, %v999_v40  ;;  %v1016_v45 = vsub.f32 %v2936_v53, %v1000_v43  ;;  %v1017_v7 = vsub.f32 %v2941_v41, %v1001_v10  ;;  %v1018_v8 = vsub.f32 %v2946_v42, %v1002_v57 }
  0xc0   : > { %v1019_v20 = vsub.f32 %v2951_v22, %v1003_v58  ;;  %v1020_v60 = vsub.f32 %v2956_v62, %v1004_v38  ;;  %v1021_v48 = vsub.f32 %v2961_v63, %v1005_v39  ;;  %v1022_v26 = vsub.f32 %v2966_v9, %v1006_v50 }
  0xc1   : > { %v1023_v33 = vmax.f32 %v1007_v4, 0.0  ;;  %v1024_v46 = vmax.f32 %v1008_v14, 0.0  ;;  %v1025_v49 = vmax.f32 %v1009_v3, 0.0  ;;  %v1026_v16 = vmax.f32 %v1010_v56, 0.0 }
  0xc2   : > { %v1027_v13 = vmax.f32 %v1011_v2, 0.0  ;;  %v1028_v51 = vmax.f32 %v1012_v47, 0.0  ;;  %v1029_v52 = vmax.f32 %v1013_v1, 0.0  ;;  %v1030_v32 = vmax.f32 %v1014_v6, 0.0 }
  0xc3   : > { %v1031_v53 = vmax.f32 %v1015_v0, 0.0  ;;  %v1032_v41 = vmax.f32 %v1016_v45, 0.0  ;;  %v1033_v44 = vmax.f32 %v1017_v7, 0.0  ;;  %v1034_v42 = vmax.f32 %v1018_v8, 0.0 }
  0xc4   : > { %v1035_v5 = vmax.f32 %v1019_v20, 0.0  ;;  %v1036_v22 = vmax.f32 %v1020_v60, 0.0  ;;  %v1037_v61 = vmax.f32 %v1021_v48, 0.0  ;;  %v1038_v62 = vmax.f32 %v1022_v26, 0.0 }
  0xc5   : > { %v1055_v40 = vrot.slane %v1023_v33, 1  ;;  %v1056_v63 = vrot.slane %v1024_v46, 1  ;;  %v1057_v43 = vrot.slane %v1025_v49, 1  ;;  %v1058_v9 = vrot.slane %v1026_v16, 1 }
  0xc6   : > { %v1059_v4 = vrot.slane %v1027_v13, 1  ;;  %v1060_v10 = vrot.slane %v1028_v51, 1  ;;  %v1061_v3 = vrot.slane %v1029_v52, 1  ;;  %v1062_v57 = vrot.slane %v1030_v32, 1 }
  0xc7   : > { %v1063_v2 = vrot.slane %v1031_v53, 1  ;;  %v1064_v58 = vrot.slane %v1032_v41, 1  ;;  %v1065_v1 = vrot.slane %v1033_v44, 1  ;;  %v1066_v38 = vrot.slane %v1034_v42, 1 }
  0xc8   : > { %v1067_v0 = vrot.slane %v1035_v5, 1  ;;  %v1068_v39 = vrot.slane %v1036_v22, 1  ;;  %v1069_v50 = vrot.slane %v1037_v61, 1  ;;  %v1070_v14 = vrot.slane %v1038_v62, 1 }
  0xc9   : > { %v3048_v56 = vmul.f32 %v1055_v40, %v1023_v33  ;;  %v3050_v47 = vmul.f32 %v1056_v63, %v1024_v46  ;;  %v3052_v6 = vmul.f32 %v1057_v43, %v1025_v49  ;;  %v3054_v45 = vmul.f32 %v1058_v9, %v1026_v16 }
  0xca   : > { %v3056_v7 = vmul.f32 %v1059_v4, %v1027_v13  ;;  %v3058_v8 = vmul.f32 %v1060_v10, %v1028_v51  ;;  %v3060_v20 = vmul.f32 %v1061_v3, %v1029_v52  ;;  %v3062_v60 = vmul.f32 %v1062_v57, %v1030_v32 }
  0xcb   : > { %v3064_v48 = vmul.f32 %v1063_v2, %v1031_v53  ;;  %v3066_v26 = vmul.f32 %v1064_v58, %v1032_v41  ;;  %v3068_v33 = vmul.f32 %v1065_v1, %v1033_v44  ;;  %v3070_v46 = vmul.f32 %v1066_v38, %v1034_v42 }
  0xcc   : > { %3614 = vst [vmem:[#allocation28_spill] sm:$0xff] %v3062_v60  ;;  %v3072_v49 = vmul.f32 %v1067_v0, %v1035_v5  ;;  %v3074_v16 = vmul.f32 %v1068_v39, %v1036_v22  ;;  %v3076_v13 = vmul.f32 %v1069_v50, %v1037_v61  ;;  %v3078_v51 = vmul.f32 %v1070_v14, %v1038_v62 }
  0xcd   : > { %3615 = vst [vmem:[#allocation40_spill] sm:$0xff] %v3064_v48  ;;  %v1119_v52 = vrot.slane %v2840_v24, 4  ;;  %v1120_v32 = vrot.slane %v2842_v21, 4  ;;  %v1121_v53 = vrot.slane %v2844_v25, 4  ;;  %v1122_v41 = vrot.slane %v2846_v19, 4 }
  0xce   : > { %3616 = vst [vmem:[#allocation41_spill] sm:$0xff] %v3066_v26  ;;  %v1123_v44 = vrot.slane %v2848_v18, 4  ;;  %v1124_v42 = vrot.slane %v2850_v17, 4  ;;  %v1125_v5 = vrot.slane %v2852_v59, 4  ;;  %v1126_v22 = vrot.slane %v2854_v31, 4 }
  0xcf   : > { %3617 = vst [vmem:[#allocation42_spill] sm:$0xff] %v3068_v33  ;;  %v1127_v61 = vrot.slane %v2856_v30, 4  ;;  %v1128_v62 = vrot.slane %v2858_v23, 4  ;;  %v1129_v40 = vrot.slane %v2860_v15, 4  ;;  %v1130_v63 = vrot.slane %v2862_v36, 4 }
  0xd0   : > { %3618 = vst [vmem:[#allocation43_spill] sm:$0xff] %v3070_v46  ;;  %v1131_v43 = vrot.slane %v2864_v37, 4  ;;  %v1132_v9 = vrot.slane %v2866_v54, 4  ;;  %v1133_v4 = vrot.slane %v2868_v55, 4  ;;  %v1134_v10 = vrot.slane %v2870_v35, 4 }
  0xd1   : > { %3619 = vst [vmem:[#allocation44_spill] sm:$0xff] %v3072_v49  ;;  %v1151_v3 = vadd.f32 %v1119_v52, %v2840_v24  ;;  %v1152_v57 = vadd.f32 %v1120_v32, %v2842_v21  ;;  %v1153_v2 = vadd.f32 %v1121_v53, %v2844_v25  ;;  %v1154_v58 = vadd.f32 %v1122_v41, %v2846_v19 }
  0xd2   : > { %3620 = vst [vmem:[#allocation45_spill] sm:$0xff] %v3074_v16  ;;  %v1155_v1 = vadd.f32 %v1123_v44, %v2848_v18  ;;  %v1156_v38 = vadd.f32 %v1124_v42, %v2850_v17  ;;  %v1157_v0 = vadd.f32 %v1125_v5, %v2852_v59  ;;  %v1158_v39 = vadd.f32 %v1126_v22, %v2854_v31 }
  0xd3   : > { %3621 = vst [vmem:[#allocation46_spill] sm:$0xff] %v3076_v13  ;;  %v1159_v50 = vadd.f32 %v1127_v61, %v2856_v30  ;;  %v1160_v14 = vadd.f32 %v1128_v62, %v2858_v23  ;;  %v1161_v24 = vadd.f32 %v1129_v40, %v2860_v15  ;;  %v1162_v21 = vadd.f32 %v1130_v63, %v2862_v36 }
  0xd4   : > { %3622 = vst [vmem:[#allocation47_spill] sm:$0xff] %v3078_v51  ;;  %v1163_v25 = vadd.f32 %v1131_v43, %v2864_v37  ;;  %v1164_v19 = vadd.f32 %v1132_v9, %v2866_v54  ;;  %v1165_v18 = vadd.f32 %v1133_v4, %v2868_v55  ;;  %v1166_v17 = vadd.f32 %v1134_v10, %v2870_v35 }
  0xd5   : > { %v3113_v59 = vsub.f32 %v1151_v3, %v3048_v56  ;;  %v3116_v31 = vsub.f32 %v1152_v57, %v3050_v47  ;;  %v3119_v23 = vsub.f32 %v1153_v2, %v3052_v6  ;;  %v3122_v30 = vsub.f32 %v1154_v58, %v3054_v45  ;;  %v3642_v3 = vld [vmem:[#allocation29_spill] sm:$0xff]  ;;  %v3644_v2 = vld [vmem:[#allocation30_spill] sm:$0xff] }
  0xd6   : > { %v3125_v15 = vsub.f32 %v1155_v1, %v3056_v7  ;;  %v3128_v36 = vsub.f32 %v1156_v38, %v3058_v8  ;;  %v3131_v37 = vsub.f32 %v1157_v0, %v3060_v20  ;;  %v3134_v54 = vsub.f32 %v1158_v39, %v3062_v60  ;;  %v3646_v1 = vld [vmem:[#allocation31_spill] sm:$0xff]  ;;  %v3648_v0 = vld [vmem:[#allocation32_spill] sm:$0xff] }
  0xd7   : > { %3623 = vst [vmem:[#allocation48_spill] sm:$0xff] %v3113_v59  ;;  %v3137_v55 = vsub.f32 %v1159_v50, %v3064_v48  ;;  %v3140_v35 = vsub.f32 %v1160_v14, %v3066_v26  ;;  %v3143_v52 = vsub.f32 %v1161_v24, %v3068_v33  ;;  %v3146_v32 = vsub.f32 %v1162_v21, %v3070_v46  ;;  %v3650_v50 = vld [vmem:[#allocation33_spill] sm:$0xff]  ;;  %v3652_v24 = vld [vmem:[#allocation34_spill] sm:$0xff] }
  0xd8   : > { %3624 = vst [vmem:[#allocation49_spill] sm:$0xff] %v3116_v31  ;;  %v3149_v53 = vsub.f32 %v1163_v25, %v3072_v49  ;;  %v3152_v41 = vsub.f32 %v1164_v19, %v3074_v16  ;;  %v3155_v44 = vsub.f32 %v1165_v18, %v3076_v13  ;;  %v3158_v42 = vsub.f32 %v1166_v17, %v3078_v51  ;;  %v3654_v19 = vld [vmem:[#allocation35_spill] sm:$0xff]  ;;  %v3680_v49 = vld [vmem:[#allocation21_spill] sm:$0xff]  ;;  %v3682_v46 = vld [vmem:[#allocation22_spill] sm:$0xff] }
  0xd9   : > { %3625 = vst [vmem:[#allocation50_spill] sm:$0xff] %v3119_v23  ;;  %v3637_v5 = vrot.slane %v2761_v27, 4  ;;  %v3638_v61 = vrot.slane %v2764_v28, 4  ;;  %v3639_v40 = vrot.slane %v2767_v29, 4  ;;  %v3640_v43 = vrot.slane %v2770_v12, 4  ;;  %v3688_v26 = vld [vmem:[#allocation25_spill] sm:$0xff] }
  0xda   : > { %3626 = vst [vmem:[#allocation51_spill] sm:$0xff] %v3128_v36  ;;  %v3641_v4 = vrot.slane %v2773_v11, 4  ;;  %v3643_v57 = vrot.slane %v3642_v3, 4  ;;  %v3645_v58 = vrot.slane %v3644_v2, 4  ;;  %v3647_v38 = vrot.slane %v3646_v1, 4 }
  0xdb   : > { %3627 = vst [vmem:[#allocation52_spill] sm:$0xff] %v3131_v37  ;;  %v1183_v22 = vmax.f32 %v2761_v27, %v3637_v5  ;;  %v1184_v62 = vmax.f32 %v2764_v28, %v3638_v61  ;;  %v1185_v63 = vmax.f32 %v2767_v29, %v3639_v40  ;;  %v1186_v9 = vmax.f32 %v2770_v12, %v3640_v43  ;;  %v3656_v5 = vld [vmem:[#allocation36_spill] sm:$0xff]  ;;  %v3658_v43 = vld [vmem:[#allocation37_spill] sm:$0xff] }
  0xdc   : > { %3628 = vst [vmem:[#allocation53_spill] sm:$0xff] %v3134_v54  ;;  %v1187_v10 = vmax.f32 %v2773_v11, %v3641_v4  ;;  %v1188_v27 = vmax.f32 %v3642_v3, %v3643_v57  ;;  %v1189_v28 = vmax.f32 %v3644_v2, %v3645_v58  ;;  %v1190_v29 = vmax.f32 %v3646_v1, %v3647_v38  ;;  %v3660_v57 = vld [vmem:[#allocation38_spill] sm:$0xff]  ;;  %v3662_v1 = vld [vmem:[#allocation39_spill] sm:$0xff] }
  0xdd   : > { %3629 = vst [vmem:[#allocation54_spill] sm:$0xff] %v3137_v55  ;;  %v3649_v39 = vrot.slane %v3648_v0, 4  ;;  %v3651_v14 = vrot.slane %v3650_v50, 4  ;;  %v3653_v21 = vrot.slane %v3652_v24, 4  ;;  %v3655_v18 = vrot.slane %v3654_v19, 4 }
  0xde   : > { %3630 = vst [vmem:[#allocation55_spill] sm:$0xff] %v3140_v35  ;;  %v3657_v61 = vrot.slane %v3656_v5, 4  ;;  %v3659_v4 = vrot.slane %v3658_v43, 4  ;;  %v3661_v2 = vrot.slane %v3660_v57, 4  ;;  %v3663_v38 = vrot.slane %v3662_v1, 4 }
  0xdf   : > { %3631 = vst [vmem:[#allocation56_spill] sm:$0xff] %v3143_v52  ;;  %v1191_v12 = vmax.f32 %v3648_v0, %v3649_v39  ;;  %v1192_v11 = vmax.f32 %v3650_v50, %v3651_v14  ;;  %v1193_v25 = vmax.f32 %v3652_v24, %v3653_v21  ;;  %v1194_v17 = vmax.f32 %v3654_v19, %v3655_v18  ;;  %v3664_v39 = vld [vmem:[#allocation11_spill] sm:$0xff]  ;;  %v3666_v24 = vld [vmem:[#allocation12_spill] sm:$0xff]  ;;  %v3668_v18 = vld [vmem:[#allocation13_spill] sm:$0xff] }
  0xe0   : > { %3632 = vst [vmem:[#allocation57_spill] sm:$0xff] %v3146_v32  ;;  %v1195_v40 = vmax.f32 %v3656_v5, %v3657_v61  ;;  %v1196_v3 = vmax.f32 %v3658_v43, %v3659_v4  ;;  %v1197_v58 = vmax.f32 %v3660_v57, %v3661_v2  ;;  %v1198_v0 = vmax.f32 %v3662_v1, %v3663_v38  ;;  %v3670_v43 = vld [vmem:[#allocation14_spill] sm:$0xff]  ;;  %v3672_v2 = vld [vmem:[#allocation15_spill] sm:$0xff]  ;;  %v3674_v38 = vld [vmem:[#allocation16_spill] sm:$0xff] }
  0xe1   : > { %3633 = vst [vmem:[#allocation58_spill] sm:$0xff] %v3149_v53  ;;  %v3665_v50 = vrot.slane %v3664_v39, 4  ;;  %v3667_v21 = vrot.slane %v3666_v24, 4  ;;  %v3669_v5 = vrot.slane %v3668_v18, 4  ;;  %v3671_v4 = vrot.slane %v3670_v43, 4 }
  0xe2   : > { %3634 = vst [vmem:[#allocation59_spill] sm:$0xff] %v3152_v41  ;;  %v3673_v51 = vrot.slane %v3672_v2, 4  ;;  %v3675_v13 = vrot.slane %v3674_v38, 4  ;;  %1961 = vrcp.f32 %v3113_v59 }
  0xe3   : > { %3635 = vst [vmem:[#allocation60_spill] sm:$0xff] %v3155_v44  ;;  %v1199_v14 = vmin.f32 %v3664_v39, %v3665_v50  ;;  %v1200_v19 = vmin.f32 %v3666_v24, %v3667_v21  ;;  %v1201_v61 = vmin.f32 %v3668_v18, %v3669_v5  ;;  %v1202_v57 = vmin.f32 %v3670_v43, %v3671_v4  ;;  %v3676_v50 = vld [vmem:[#allocation17_spill] sm:$0xff]  ;;  %v3678_v21 = vld [vmem:[#allocation20_spill] sm:$0xff] }
  0xe4   : > { %3636 = vst [vmem:[#allocation61_spill] sm:$0xff] %v3158_v42  ;;  %v1203_v1 = vmin.f32 %v3672_v2, %v3673_v51  ;;  %v1204_v39 = vmin.f32 %v3674_v38, %v3675_v13  ;;  %v3677_v16 = vrot.slane %v3676_v50, 4  ;;  %v3679_v18 = vrot.slane %v3678_v21, 4  ;;  %v3684_v13 = vld [vmem:[#allocation23_spill] sm:$0xff] }
  0xe5   : > { %v3681_v43 = vrot.slane %v3680_v49, 4  ;;  %v3683_v51 = vrot.slane %v3682_v46, 4  ;;  %1963 = vrcp.f32 %v3116_v31  ;;  %v3685_v38 = vrot.slane %v3684_v13, 4 }
  0xe6   : > { %v1205_v24 = vmin.f32 %v3676_v50, %v3677_v16  ;;  %v1206_v5 = vmin.f32 %v3678_v21, %v3679_v18  ;;  %v3686_v50 = vld [vmem:[#allocation24_spill] sm:$0xff]  ;;  %v3689_v21 = vrot.slane %v3688_v26, 4  ;;  %1965 = vrcp.f32 %v3119_v23 }
  0xe7   : > { %v1207_v4 = vmin.f32 %v3680_v49, %v3681_v43  ;;  %v1208_v2 = vmin.f32 %v3682_v46, %v3683_v51  ;;  %v1209_v16 = vmin.f32 %v3684_v13, %v3685_v38  ;;  %v3687_v59 = vrot.slane %v3686_v50, 4  ;;  %v3690_v49 = vld [vmem:[#allocation26_spill] sm:$0xff]  ;;  %v3692_v51 = vld [vmem:[#allocation27_spill] sm:$0xff] }
  0xe8   : > { %v1211_v18 = vmin.f32 %v3688_v26, %v3689_v21  ;;  %v3691_v43 = vrot.slane %v3690_v49, 4  ;;  %v3693_v31 = vrot.slane %v3692_v51, 4  ;;  %v3694_v13 = vrot.slane %v3597_v34, 4 }
  0xe9   : > { %v1210_v33 = vmin.f32 %v3686_v50, %v3687_v59  ;;  %1967 = vrcp.f32 %v3122_v30  ;;  %v1215_v59 = vsub.f32 %v1183_v22, %v1199_v14  ;;  %v1216_v50 = vsub.f32 %v1184_v62, %v1200_v19 }
  0xea   : > { %v1212_v46 = vmin.f32 %v3690_v49, %v3691_v43  ;;  %v1213_v48 = vmin.f32 %v3692_v51, %v3693_v31  ;;  %v1214_v38 = vmin.f32 %v3597_v34, %v3694_v13  ;;  %v1217_v60 = vsub.f32 %v1185_v63, %v1201_v61  ;;  %v3262_v49 = vpop.eup %1961 }
  0xeb   : > { %1969 = vrcp.f32 %v3125_v15  ;;  %v1218_v26 = vsub.f32 %v1186_v9, %v1202_v57  ;;  %v1219_v21 = vsub.f32 %v1187_v10, %v1203_v1  ;;  %v1220_v23 = vsub.f32 %v1188_v27, %v1204_v39  ;;  %v3265_v34 = vpop.eup %1963 }
  0xec   : > { %1971 = vrcp.f32 %v3128_v36  ;;  %v1221_v43 = vsub.f32 %v1189_v28, %v1205_v24  ;;  %v1222_v31 = vsub.f32 %v1190_v29, %v1206_v5  ;;  %v1223_v51 = vsub.f32 %v1191_v12, %v1207_v4  ;;  %v3268_v63 = vpop.eup %1965 }
  0xed   : > { %1973 = vrcp.f32 %v3131_v37  ;;  %v1224_v13 = vsub.f32 %v1192_v11, %v1208_v2  ;;  %v1225_v22 = vsub.f32 %v1193_v25, %v1209_v16  ;;  %v1226_v62 = vsub.f32 %v1194_v17, %v1210_v33 }
  0xee   : > { %1975 = vrcp.f32 %v3134_v54  ;;  %v1227_v9 = vsub.f32 %v1195_v40, %v1211_v18  ;;  %v1228_v10 = vsub.f32 %v1196_v3, %v1212_v46  ;;  %v1247_v27 = vrot.slane %v1215_v59, 1 }
  0xef   : > { %1977 = vrcp.f32 %v3137_v55  ;;  %v1968_v14 = vpop.eup %1967  ;;  %v1229_v28 = vsub.f32 %v1197_v58, %v1213_v48  ;;  %v1230_v29 = vsub.f32 %v1198_v0, %v1214_v38  ;;  %v1248_v12 = vrot.slane %v1216_v50, 1 }
  0xf0   : > { %1979 = vrcp.f32 %v3140_v35  ;;  %v1249_v61 = vrot.slane %v1217_v60, 1  ;;  %v1250_v11 = vrot.slane %v1218_v26, 1  ;;  %v1251_v25 = vrot.slane %v1219_v21, 1 }
  0xf1   : > { %v1970_v19 = vpop.eup %1969  ;;  %1981 = vrcp.f32 %v3143_v52  ;;  %v1252_v17 = vrot.slane %v1220_v23, 1  ;;  %v1253_v57 = vrot.slane %v1221_v43, 1  ;;  %v1254_v40 = vrot.slane %v1222_v31, 1 }
  0xf2   : > { %v1972_v33 = vpop.eup %1971  ;;  %1983 = vrcp.f32 %v3146_v32  ;;  %v1255_v1 = vrot.slane %v1223_v51, 1  ;;  %v1256_v39 = vrot.slane %v1224_v13, 1  ;;  %v1279_v48 = vmul.f32 %v1247_v27, %v1215_v59 }
  0xf3   : > { %v1974_v3 = vpop.eup %1973  ;;  %1985 = vrcp.f32 %v3149_v53  ;;  %v1257_v0 = vrot.slane %v1225_v22, 1  ;;  %v1258_v24 = vrot.slane %v1226_v62, 1  ;;  %v1280_v5 = vmul.f32 %v1248_v12, %v1216_v50 }
  0xf4   : > { %v1976_v58 = vpop.eup %1975  ;;  %1987 = vrcp.f32 %v3152_v41  ;;  %v1259_v2 = vrot.slane %v1227_v9, 1  ;;  %v1260_v16 = vrot.slane %v1228_v10, 1  ;;  %v1281_v18 = vmul.f32 %v1249_v61, %v1217_v60 }
  0xf5   : > { %v1978_v4 = vpop.eup %1977  ;;  %1989 = vrcp.f32 %v3155_v44  ;;  %v1261_v38 = vrot.slane %v1229_v28, 1  ;;  %v1262_v32 = vrot.slane %v1230_v29, 1  ;;  %v1282_v52 = vmul.f32 %v1250_v11, %v1218_v26 }
  0xf6   : > { %v1980_v46 = vpop.eup %1979  ;;  %1991 = vrcp.f32 %v3158_v42  ;;  %v1283_v27 = vmul.f32 %v1251_v25, %v1219_v21  ;;  %v1284_v53 = vmul.f32 %v1252_v17, %v1220_v23  ;;  %v1285_v35 = vmul.f32 %v1253_v57, %v1221_v43  ;;  %v3703_v25 = vld [vmem:[#allocation45_spill] sm:$0xff]  ;;  %v3704_v17 = vld [vmem:[#allocation50_spill] sm:$0xff] }
  0xf7   : > { %v1982_v59 = vpop.eup %1981  ;;  %1993 = vrcp.f32 %v1279_v48  ;;  %v1286_v12 = vmul.f32 %v1254_v40, %v1222_v31  ;;  %v1287_v41 = vmul.f32 %v1255_v1, %v1223_v51  ;;  %v1288_v55 = vmul.f32 %v1256_v39, %v1224_v13  ;;  %v3705_v1 = vld [vmem:[#allocation46_spill] sm:$0xff] }
  0xf8   : > { %v1984_v50 = vpop.eup %1983  ;;  %1995 = vrcp.f32 %v1280_v5  ;;  %v1289_v60 = vmul.f32 %v1257_v0, %v1225_v22  ;;  %v1290_v61 = vmul.f32 %v1258_v24, %v1226_v62  ;;  %v1291_v44 = vmul.f32 %v1259_v2, %v1227_v9  ;;  %v3695_v62 = vld [vmem:[#allocation28_spill] sm:$0xff] }
  0xf9   : > { %v1986_v54 = vpop.eup %1985  ;;  %1997 = vrcp.f32 %v1281_v18  ;;  %v1292_v36 = vmul.f32 %v1260_v16, %v1228_v10  ;;  %v1293_v26 = vmul.f32 %v1261_v38, %v1229_v28  ;;  %v1294_v11 = vmul.f32 %v1262_v32, %v1230_v29  ;;  %v3699_v10 = vld [vmem:[#allocation48_spill] sm:$0xff] }
  0xfa   : > { %v1988_v37 = vpop.eup %1987  ;;  %1999 = vrcp.f32 %v1282_v52  ;;  %v1327_v23 = vmul.f32 %v3262_v49, %v3048_v56  ;;  %v1328_v21 = vmul.f32 %v3265_v34, %v3050_v47  ;;  %v1329_v43 = vmul.f32 %v3268_v63, %v3052_v6  ;;  %v3696_v49 = vld [vmem:[#allocation40_spill] sm:$0xff]  ;;  %v3697_v34 = vld [vmem:[#allocation41_spill] sm:$0xff]  ;;  %v3698_v63 = vld [vmem:[#allocation42_spill] sm:$0xff] }
  0xfb   : > { %v1990_v42 = vpop.eup %1989  ;;  %2001 = vrcp.f32 %v1283_v27  ;;  %v1330_v51 = vmul.f32 %v1968_v14, %v3054_v45  ;;  %v1331_v13 = vmul.f32 %v1970_v19, %v3056_v7  ;;  %v1332_v32 = vmul.f32 %v1972_v33, %v3058_v8  ;;  %v3700_v7 = vld [vmem:[#allocation43_spill] sm:$0xff]  ;;  %v3701_v28 = vld [vmem:[#allocation44_spill] sm:$0xff]  ;;  %v3709_v27 = vld [vmem:[#allocation53_spill] sm:$0xff] }
  0xfc   : > { %v1992_v31 = vpop.eup %1991  ;;  %2003 = vrcp.f32 %v1284_v53  ;;  %v1333_v22 = vmul.f32 %v1974_v3, %v3060_v20  ;;  %v1334_v56 = vmul.f32 %v1976_v58, %v3695_v62  ;;  %v1335_v9 = vmul.f32 %v1978_v4, %v3696_v49  ;;  %v3702_v20 = vld [vmem:[#allocation49_spill] sm:$0xff]  ;;  %v3712_v49 = vld [vmem:[#allocation56_spill] sm:$0xff] }
  0xfd   : > { %v1994_v52 = vpop.eup %1993  ;;  %2005 = vrcp.f32 %v1285_v35  ;;  %v1336_v6 = vmul.f32 %v1980_v46, %v3697_v34  ;;  %v1337_v53 = vmul.f32 %v1982_v59, %v3698_v63  ;;  %v1338_v8 = vmul.f32 %v1984_v50, %v3700_v7 }
  0xfe   : > { %v1996_v47 = vpop.eup %1995  ;;  %2007 = vrcp.f32 %v1286_v12  ;;  %v1343_v45 = vmul.f32 %v1994_v52, %v3699_v10  ;;  %v3295_v35 = vmul.f32 %v1986_v54, %v3701_v28  ;;  %v3299_v33 = vmul.f32 %v1988_v37, %v3703_v25  ;;  %v3706_v54 = vld [vmem:[#allocation47_spill] sm:$0xff]  ;;  %v3713_v10 = vld [vmem:[#allocation57_spill] sm:$0xff]  ;;  %v3714_v28 = vld [vmem:[#allocation58_spill] sm:$0xff] }
  0xff   : > { %v1998_v14 = vpop.eup %1997  ;;  %2009 = vrcp.f32 %v1287_v41  ;;  %v1344_v29 = vmul.f32 %v1996_v47, %v3702_v20  ;;  %v1341_v39 = vmul.f32 %v1990_v42, %v3705_v1  ;;  %v1342_v0 = vmul.f32 %v1992_v31, %v3706_v54  ;;  %v3707_v37 = vld [vmem:[#allocation51_spill] sm:$0xff]  ;;  %v3708_v42 = vld [vmem:[#allocation52_spill] sm:$0xff] }
 0x100   : > { %v2000_v19 = vpop.eup %1999  ;;  %2011 = vrcp.f32 %v1288_v55  ;;  %v1345_v57 = vmul.f32 %v1998_v14, %v3704_v17  ;;  %v1359_v40 = vadd.f32 %v1343_v45, %v1327_v23  ;;  %v3711_v31 = vld [vmem:[#allocation55_spill] sm:$0xff] }
 0x101   : > { %v2002_v3 = vpop.eup %2001  ;;  %2013 = vrcp.f32 %v1289_v60  ;;  %v1346_v41 = vmul.f32 %v2000_v19, %v3122_v30  ;;  %v1360_v48 = vadd.f32 %v1344_v29, %v1328_v21  ;;  %v3715_v17 = vld [vmem:[#allocation59_spill] sm:$0xff] }
 0x102   : > { %v2004_v58 = vpop.eup %2003  ;;  %2015 = vrcp.f32 %v1290_v61  ;;  %v1347_v24 = vmul.f32 %v2002_v3, %v3125_v15  ;;  %v1361_v55 = vadd.f32 %v1345_v57, %v1329_v43  ;;  %v3307_v16 = vadd.f32 -1.0, %v1359_v40 }
 0x103   : > { %v2006_v5 = vpop.eup %2005  ;;  %2017 = vrcp.f32 %v1291_v44  ;;  %v1348_v4 = vmul.f32 %v2004_v58, %v3707_v37  ;;  %v1362_v2 = vadd.f32 %v1346_v41, %v1330_v51  ;;  %v1876_v38 = vadd.f32 -1.0, %v1360_v48  ;;  %v3710_v44 = vld [vmem:[#allocation54_spill] sm:$0xff]  ;;  %v3716_v41 = vld [vmem:[#allocation60_spill] sm:$0xff] }
 0x104   : > { %v2008_v18 = vpop.eup %2007  ;;  %2019 = vrcp.f32 %v1292_v36  ;;  %v1349_v46 = vmul.f32 %v2006_v5, %v3708_v42  ;;  %v1363_v30 = vadd.f32 %v1347_v24, %v1331_v13  ;;  %v1877_v15 = vadd.f32 -1.0, %v1361_v55  ;;  %v3717_v24 = vld [vmem:[#allocation61_spill] sm:$0xff] }
 0x105   : > { %v2010_v59 = vpop.eup %2009  ;;  %2021 = vrcp.f32 %v1293_v26  ;;  %v1350_v50 = vmul.f32 %v2008_v18, %v3709_v27  ;;  %v1364_v12 = vadd.f32 %v1348_v4, %v1332_v32  ;;  %v1878_v21 = vadd.f32 -1.0, %v1362_v2 }
 0x106   : > { %v2012_v60 = vpop.eup %2011  ;;  %2023 = vrcp.f32 %v1294_v11  ;;  %v1351_v61 = vmul.f32 %v2010_v59, %v3710_v44  ;;  %v1365_v23 = vadd.f32 %v1349_v46, %v1333_v22  ;;  %v1879_v52 = vadd.f32 -1.0, %v1363_v30 }
 0x107   : > { %v2014_v43 = vpop.eup %2013  ;;  %v1352_v51 = vmul.f32 %v2012_v60, %v3711_v31  ;;  %v1366_v36 = vadd.f32 %v1350_v50, %v1334_v56  ;;  %v1880_v62 = vadd.f32 -1.0, %v1364_v12  ;;  %v1393_v32 = vsub.f32 1.0, %v3307_v16 }
 0x108   : > { %v2016_v13 = vpop.eup %2015  ;;  %v1353_v47 = vmul.f32 %v2014_v43, %v3712_v49  ;;  %v1367_v26 = vadd.f32 %v1351_v61, %v1335_v9  ;;  %v1881_v34 = vadd.f32 -1.0, %v1365_v23  ;;  %v1394_v22 = vsub.f32 1.0, %v1876_v38 }
 0x109   : > { %v2018_v63 = vpop.eup %2017  ;;  %v1354_v11 = vmul.f32 %v2016_v13, %v3713_v10  ;;  %v1368_v45 = vadd.f32 %v1352_v51, %v1336_v6  ;;  %v1882_v14 = vadd.f32 -1.0, %v1366_v36  ;;  %v1395_v19 = vsub.f32 1.0, %v1877_v15 }
 0x10a   : > { %v2020_v7 = vpop.eup %2019  ;;  %v1355_v20 = vmul.f32 %v2018_v63, %v3714_v28  ;;  %v1369_v29 = vadd.f32 %v1353_v47, %v1337_v53  ;;  %v1883_v56 = vadd.f32 -1.0, %v1367_v26  ;;  %v1396_v3 = vsub.f32 1.0, %v1878_v21 }
 0x10b   : > { %v2022_v25 = vpop.eup %2021  ;;  %v1356_v57 = vmul.f32 %v2020_v7, %v3715_v17  ;;  %v1370_v40 = vadd.f32 %v1354_v11, %v1338_v8  ;;  %v1884_v9 = vadd.f32 -1.0, %v1368_v45  ;;  %v1397_v54 = vsub.f32 1.0, %v1879_v52 }
 0x10c   : > { %v2024_v1 = vpop.eup %2023  ;;  %v1357_v48 = vmul.f32 %v2022_v25, %v3716_v41  ;;  %v1371_v58 = vadd.f32 %v1355_v20, %v3295_v35  ;;  %v1885_v6 = vadd.f32 -1.0, %v1369_v29  ;;  %v1398_v37 = vsub.f32 1.0, %v1880_v62 }
 0x10d   : > { %v1358_v55 = vmul.f32 %v2024_v1, %v3717_v24  ;;  %v1372_v5 = vadd.f32 %v1356_v57, %v3299_v33  ;;  %v1886_v53 = vadd.f32 -1.0, %v1370_v40  ;;  %v1399_v16 = vsub.f32 1.0, %v1881_v34 }
 0x10e   : > { %v1373_v4 = vadd.f32 %v1357_v48, %v1341_v39  ;;  %v1887_v2 = vadd.f32 -1.0, %v1371_v58  ;;  %v1400_v18 = vsub.f32 1.0, %v1882_v14  ;;  %v1402_v46 = vsub.f32 1.0, %v1884_v9 }
 0x10f   : > { %v1374_v8 = vadd.f32 %v1358_v55, %v1342_v0  ;;  %v1888_v42 = vadd.f32 -1.0, %v1372_v5  ;;  %v1403_v30 = vsub.f32 1.0, %v1885_v6  ;;  %v1404_v59 = vsub.f32 1.0, %v1886_v53  ;;  %v3719_v55 = vld [vmem:[#allocation19_spill] sm:$0xff] }
 0x110   : > { %v1889_v38 = vadd.f32 -1.0, %v1373_v4  ;;  %v1405_v27 = vsub.f32 1.0, %v1887_v2  ;;  %v1425_v35 = vrot.slane %v1394_v22, 7  ;;  %v1426_v15 = vrot.slane %v1395_v19, 6 }
 0x111   : > { %v1890_v50 = vadd.f32 -1.0, %v1374_v8  ;;  %v1406_v12 = vsub.f32 1.0, %v1888_v42  ;;  %v1427_v60 = vrot.slane %v1396_v3, 5  ;;  %v1428_v33 = vrot.slane %v1397_v54, 4 }
 0x112   : > { %v1407_v44 = vsub.f32 1.0, %v1889_v38  ;;  %v1429_v61 = vrot.slane %v1398_v37, 3  ;;  %v1430_v23 = vrot.slane %v1399_v16, 2  ;;  %v1401_v39 = vsub.f32 1.0, %v1883_v56 }
 0x113   : > { %v1408_v21 = vsub.f32 1.0, %v1890_v50  ;;  %v1431_v43 = vrot.slane %v1400_v18, 1  ;;  %v1432_v31 = vrot.slane %v1402_v46, 7  ;;  %v1433_v0 = vrot.slane %v1403_v30, 6 }
 0x114   : > { %v1434_v51 = vrot.slane %v1404_v59, 5  ;;  %v1435_v36 = vrot.slane %v1405_v27, 4  ;;  %v1436_v52 = vrot.slane %v1406_v12, 3  ;;  %v1439_v62 = vsel %vm677_vm6, %v1393_v32, %v1425_v35 }
 0x115   : > { %v1440_v13 = vsel %vm679_vm7, %v1426_v15, %v1427_v60  ;;  %v1442_v49 = vsel %vm683_vm9, %v1428_v33, %v1429_v61  ;;  %v1437_v47 = vrot.slane %v1407_v44, 2  ;;  %v1438_v26 = vrot.slane %v1408_v21, 1 }
 0x116   : > { %v1441_v34 = vsel %vm681_vm8, %v1439_v62, %v1440_v13  ;;  %v1443_v63 = vsel %vm685_vm10, %v1430_v23, %v1431_v43  ;;  %v1446_v45 = vsel %vm677_vm6, %v1401_v39, %v1432_v31  ;;  %v1447_v14 = vsel %vm679_vm7, %v1433_v0, %v1434_v51 }
 0x117   : > { %v1444_v10 = vsel %vm687_vm11, %v1442_v49, %v1443_v63  ;;  %v1449_v32 = vsel %vm683_vm9, %v1435_v36, %v1436_v52  ;;  %v1450_v28 = vsel %vm685_vm10, %v1437_v47, %v1438_v26  ;;  %v1448_v25 = vsel %vm681_vm8, %v1446_v45, %v1447_v14  ;;  %v1538_v47 = vpop.xlane.xlu0 %1537  ;;  %v1695_v14 = vpop.xlane.xlu1 %1694 }
 0x118   : > { %v1445_v11 = vsel %vm534_vm2, %v1441_v34, %v1444_v10  ;;  %v1451_v17 = vsel %vm687_vm11, %v1449_v32, %v1450_v28  ;;  %v1539_v26 = vrot.slane %v1538_v47, 4  ;;  %v1696_v32 = vrot.slane %v1695_v14, 4 }
 0x119   : > { %v1455_v7 = vsel %vm320_vm5, %v1445_v11, 0.0  ;;  %v1452_v41 = vsel %vm534_vm2, %v1448_v25, %v1451_v17  ;;  %vm3720_vm5 = vcmp.gt.f32.partialorder %v3719_v55, 0.0  ;;  %vm1547_vm2 = vcmask 0  }
 0x11a   : > { %v1553_v20 = vperm.slane %v1455_v7, 0  ;;  %v1554_v29 = vperm.slane %v1455_v7, 1  ;;  %v1555_v56 = vperm.slane %v1455_v7, 2  ;;  %v1556_v19 = vperm.slane %v1455_v7, 3 }
 0x11b   : > { %v1557_v57 = vperm.slane %v1455_v7, 4  ;;  %v1558_v48 = vperm.slane %v1455_v7, 5  ;;  %v1559_v54 = vperm.slane %v1455_v7, 6  ;;  %v1456_v5 = vsel %vm3720_vm5, %v1452_v41, 0.0 }
 0x11c   : > { %v1585_v40 = vsel %vm677_vm6, %v1553_v20, 0.0  ;;  %v1586_v9 = vsel %vm677_vm6, %v1554_v29, 0.0  ;;  %v1588_v3 = vsel %vm677_vm6, %v1555_v56, 0.0  ;;  %v1590_v58 = vsel %vm677_vm6, %v1556_v19, 0.0 }
 0x11d   : > { %v1587_v1 = vadd.f32 %v1586_v9, %v1585_v40  ;;  %v1592_v24 = vsel %vm677_vm6, %v1557_v57, 0.0  ;;  %v1560_v37 = vperm.slane %v1455_v7, 7  ;;  %v1594_v4 = vsel %vm677_vm6, %v1558_v48, 0.0 }
 0x11e   : > { %v1561_v16 = vperm.slane %v1456_v5, 0  ;;  %v1596_v18 = vsel %vm677_vm6, %v1559_v54, 0.0  ;;  %v1562_v42 = vperm.slane %v1456_v5, 1  ;;  %v1563_v38 = vperm.slane %v1456_v5, 2 }
 0x11f   : > { %v1589_v6 = vadd.f32 %v1588_v3, %v1587_v1  ;;  %v1598_v46 = vsel %vm677_vm6, %v1560_v37, 0.0  ;;  %v1564_v35 = vperm.slane %v1456_v5, 3  ;;  %v1565_v15 = vperm.slane %v1456_v5, 4 }
 0x120   : > { %v1600_v59 = vsel %vm677_vm6, %v1561_v16, 0.0  ;;  %v1602_v50 = vsel %vm677_vm6, %v1562_v42, 0.0  ;;  %v1604_v60 = vsel %vm677_vm6, %v1563_v38, 0.0  ;;  %v1566_v33 = vperm.slane %v1456_v5, 5 }
 0x121   : > { %v1591_v53 = vadd.f32 %v1590_v58, %v1589_v6  ;;  %v1606_v61 = vsel %vm677_vm6, %v1564_v35, 0.0  ;;  %v1567_v39 = vperm.slane %v1456_v5, 6  ;;  %v1608_v21 = vsel %vm677_vm6, %v1565_v15, 0.0 }
 0x122   : > { %v1568_v31 = vperm.slane %v1456_v5, 7  ;;  %v1610_v0 = vsel %vm677_vm6, %v1566_v33, 0.0  ;;  %v1540_v34 = vadd.f32 %v1539_v26, %v1538_v47  ;;  %v1697_v22 = vadd.f32 %v1696_v32, %v1695_v14 }
 0x123   : > { %v1593_v2 = vadd.f32 %v1592_v24, %v1591_v53  ;;  %v1612_v36 = vsel %vm677_vm6, %v1567_v39, 0.0 }
 0x124   : > { %v1614_v62 = vsel %vm677_vm6, %v1568_v31, 0.0  ;;  %v1541_v63 = vrot.slane %v1540_v34, 2  ;;  %v1698_v28 = vrot.slane %v1697_v22, 2 }
 0x125   : > { %v1595_v8 = vadd.f32 %v1594_v4, %v1593_v2 }
 0x126   : > { %v1542_v10 = vadd.f32 %v1541_v63, %v1540_v34  ;;  %v1699_v56 = vadd.f32 %v1698_v28, %v1697_v22 }
 0x127   : > { %v1597_v30 = vadd.f32 %v1596_v18, %v1595_v8 }
 0x128   : > { %v1543_v11 = vrot.slane %v1542_v10, 1  ;;  %v1700_v17 = vrot.slane %v1699_v56, 1 }
 0x129   : > { %v1599_v27 = vadd.f32 %v1598_v46, %v1597_v30 }
 0x12a   : > { %v1544_v45 = vadd.f32 %v1543_v11, %v1542_v10  ;;  %v1701_v9 = vadd.f32 %v1700_v17, %v1699_v56 }
 0x12b   : > { %v1601_v12 = vadd.f32 %v1600_v59, %v1599_v27 }
 0x12c   : > { %1894 = vpush %v1544_v45 }
 0x12d   : > { %v1603_v44 = vadd.f32 %v1602_v50, %v1601_v12 }
 0x12f   : > { %v1605_v23 = vadd.f32 %v1604_v60, %v1603_v44 }
 0x131   : > { %v1607_v43 = vadd.f32 %v1606_v61, %v1605_v23 }
 0x133   : > { %v1609_v51 = vadd.f32 %v1608_v21, %v1607_v43 }
 0x135   : > { %v1611_v52 = vadd.f32 %v1610_v0, %v1609_v51 }
 0x137   : > { %v1613_v13 = vadd.f32 %v1612_v36, %v1611_v52 }
 0x139   : > { %v1615_v49 = vadd.f32 %v1614_v62, %v1613_v13 }
 0x13b   : > { %1616 = vadd.xlane.f32.xlu0 %v1615_v49 }
 0x15d   : > { %s1895_s13 = spop %1894 }
 0x15e   : > { %v1546_v3 = vstv %s1895_s13 }
 0x15f   : > { %1548 = vst.msk [vmem:[%s285_s11] sm:$0x1] %vm1547_vm2, %v1546_v3 }
 0x1ae   : > { %v1617_v7 = vpop.xlane.xlu0 %1616 }
 0x1af   : > { %v1618_v20 = vrot.slane %v1617_v7, 4 }
 0x1b1   : > { %v1619_v29 = vadd.f32 %v1618_v20, %v1617_v7 }
 0x1b3   : > { %v1620_v19 = vrot.slane %v1619_v29, 2 }
 0x1b5   : > { %v1621_v25 = vadd.f32 %v1620_v19, %v1619_v29 }
 0x1b7   : > { %v1622_v57 = vrot.slane %v1621_v25, 1 }
 0x1b9   : > { %v1623_v40 = vadd.f32 %v1622_v57, %v1621_v25 }
 0x1bb   : > { %1896 = vpush %v1623_v40 }
 0x1bc   : > { %1898 = vpush %v1701_v9 }
 0x1ec   : > { %s1897_s29 = spop %1896 }
 0x1ed   : > { %v1625_v1 = vstv %s1897_s29  ;;  %s1899_s30 = spop %1898 }
 0x1ee   : > { %1626 = vst.msk [vmem:[%s288_s21] sm:$0x1] %vm1547_vm2, %v1625_v1  ;;  %v1703_v41 = vstv %s1899_s30 }
 0x1ef   : > { %1704 = vst.msk [vmem:[%s291_s24] sm:$0x1] %vm1547_vm2, %v1703_v41 }
 0x1f0 PF: > { %s21_s20 = sadd.s32 1, %s2139_s20   ;;  %s3721_s15 = smov %s2123_s16 }
 0x1f1   : > { %p18_p0 = scmp.ge.s32.totalorder %s21_s20, 4   ;;  %s3722_s16 = smov %s2127_s17 }
 0x1f2   : > { %s3723_s17 = smov %s2216_s27  ;;  %s3724_s18 = smov %s2135_s19 }
 0x1f3   : > { %s3725_s19 = smov %s3727_s22  ;;  %20 = sbr.rel (!%p18_p0) target bundleno = 6 (0x6), region = 113 }
 0x1f8   :  { %1746 = vsyncpa [#allocation6], 1 }
 0x1f9   :  { %1748 = vsyncpa [#allocation6 + $0x1], 1 }
 0x1fa   :  { %1749 = vsyncpa [#allocation8], 1 }
 0x1fb   :  { %1751 = vsyncpa [#allocation8 + $0x1], 1 }

</bundles_post_ra>
